<compile_context>
chip_gen: v6e
topology: v6e:2x2x1
jax: 0.10.0
libtpu: 0.0.40
codegen_flags: <defaults>
</compile_context>

<pallas_src>
import functools

import jax
import jax.numpy as jnp
from jax.experimental import pallas as pl
from jax.experimental.pallas import tpu as pltpu

ALL_CHAR = "abcdefghijklmnopqrstuvwxyzABCDEFGHIJKLMNOPQRSTUVWXYZ0123456789 -,.?!:()[]'$\t\n"
VECT_SIZE = len(ALL_CHAR)   # 77
VECT_PAD = 128              # vocab padded to one full lane width
HIDDEN = 32
BATCH = 2
BATCH_PAD = 8               # pad batch to the f32 sublane count

NEG_PAD = -1e30             # bias for padded vocab lanes -> exp() == 0 in softmax
MAX_CHUNK = 32              # timesteps per grid iteration (statically unrolled in-kernel)

# Row offsets inside the fused weight slab (all multiples of 8, 128 lanes wide).
ROW_W1 = 0                              # lin1 weight, padded (128, 128)
ROW_WIH1 = ROW_W1 + VECT_PAD            # 128: cell-1 input proj, padded (128, 128)
ROW_WHH1 = ROW_WIH1 + VECT_PAD          # 256: cell-1 hidden proj (32, 128)
ROW_WIH2 = ROW_WHH1 + HIDDEN            # 288: cell-2 input proj (32, 128)
ROW_WHH2 = ROW_WIH2 + HIDDEN            # 320: cell-2 hidden proj (32, 128)
ROW_WOUT = ROW_WHH2 + HIDDEN            # 352: out weight, padded (32, 128)
W_ROWS = ROW_WOUT + HIDDEN              # 384


def _simple_rnn_kernel(x_ref, s0_ref, w_ref, b_ref,
                       out_ref, sn_ref,
                       state_s, h2_buf,
                       *, total_steps):
    H = HIDDEN
    C, Bp, Vp = x_ref.shape
    gi = pl.program_id(0)

    # Load initial recurrent state into the persistent scratch on the first chunk.
    @pl.when(gi == 0)
    def _():
        state_s[...] = s0_ref[...]

    b1 = b_ref[0:1, :]      # lin1 bias (padded lanes are zero)
    bl1 = b_ref[1:2, :]     # cell-1 fused bias (bias_ih + bias_hh)
    bl2 = b_ref[2:3, :]     # cell-2 fused bias
    bout = b_ref[3:4, :]    # out bias (padded vocab lanes carry -1e30)

    # ---- chunk prologue (non-recurrent, batched over all C*Bp rows) ----
    # A = ReLU(X @ W1 + b1); columns >= H of A are exactly zero (padded W1/b1),
    # so P1 = A @ Wih1_pad + bl1 equals A[:, :H] @ Wih1 + bl1.
    x2 = x_ref[...].reshape(C * Bp, Vp)
    a = jnp.maximum(
        jnp.dot(x2, w_ref[ROW_W1:ROW_WIH1, :],
                preferred_element_type=jnp.float32) + b1, 0.0)
    p1 = (jnp.dot(a, w_ref[ROW_WIH1:ROW_WHH1, :],
                  preferred_element_type=jnp.float32) + bl1).reshape(C, Bp, Vp)

    whh1 = w_ref[ROW_WHH1:ROW_WIH2, :]      # (32, 128)
    wih2 = w_ref[ROW_WIH2:ROW_WHH2, :]      # (32, 128)
    whh2 = w_ref[ROW_WHH2:ROW_WOUT, :]      # (32, 128)

    h1 = state_s[0]
    c1 = state_s[1]
    h2 = state_s[2]
    c2 = state_s[3]

    def gates_to_hc(gates, c_prev):
        # Full-width sigmoid/tanh on the (Bp, 128) gate tile: 2 EUP calls/cell.
        sg = jax.nn.sigmoid(gates)
        tg = jnp.tanh(gates)
        c_new = sg[:, H:2 * H] * c_prev + sg[:, 0:H] * tg[:, 2 * H:3 * H]
        h_new = sg[:, 3 * H:4 * H] * jnp.tanh(c_new)
        return h_new, c_new

    needs_guard = (total_steps % C) != 0    # only the last chunk can hold pad steps

    # ---- serial recurrence over the chunk (statically unrolled) ----
    for i in range(C):
        g1 = p1[i] + jnp.dot(h1, whh1, preferred_element_type=jnp.float32)
        h1n, c1n = gates_to_hc(g1, c1)
        g2 = (jnp.dot(h1n, wih2, preferred_element_type=jnp.float32)
              + jnp.dot(h2, whh2, preferred_element_type=jnp.float32) + bl2)
        h2n, c2n = gates_to_hc(g2, c2)
        h2_buf[i] = h2n
        if needs_guard:
            valid = (gi * C + i) < total_steps
            h1 = jnp.where(valid, h1n, h1)
            c1 = jnp.where(valid, c1n, c1)
            h2 = jnp.where(valid, h2n, h2)
            c2 = jnp.where(valid, c2n, c2)
        else:
            h1, c1, h2, c2 = h1n, c1n, h2n, c2n

    # Carry state across chunks (one store per chunk, not per step).
    state_s[0] = h1
    state_s[1] = c1
    state_s[2] = h2
    state_s[3] = c2

    # ---- chunk epilogue: output projection + log_softmax, batched ----
    h2_all = h2_buf[...].reshape(C * Bp, H)
    logits = jnp.dot(h2_all, w_ref[ROW_WOUT:W_ROWS, :],
                     preferred_element_type=jnp.float32) + bout
    m = jnp.max(logits, axis=1, keepdims=True)
    shifted = logits - m
    lse = jnp.log(jnp.sum(jnp.exp(shifted), axis=1, keepdims=True))
    out_ref[...] = (shifted - lse).reshape(C, Bp, Vp)

    # Final state written back only on the last chunk.
    @pl.when(gi == pl.num_programs(0) - 1)
    def _():
        sn_ref[...] = state_s[...]


def pack_params(params):
    """Pack all weights into one (384,128) slab and all biases into one (4,128) slab."""
    (w1, b1, wih1, whh1, bl1, wih2, whh2, bl2, wout, bout) = params
    H, V, Vp = HIDDEN, VECT_SIZE, VECT_PAD
    assert 4 * H == Vp

    w1p = jnp.zeros((Vp, Vp), jnp.float32).at[:V, :H].set(w1)
    wih1p = jnp.zeros((Vp, 4 * H), jnp.float32).at[:H, :].set(wih1)
    woutp = jnp.zeros((H, Vp), jnp.float32).at[:, :V].set(wout)
    w_slab = jnp.concatenate([w1p, wih1p, whh1, wih2, whh2, woutp], axis=0)  # (384,128)

    b1p = jnp.zeros((1, Vp), jnp.float32).at[0, :H].set(b1.reshape(-1))
    boutp = jnp.full((1, Vp), NEG_PAD, jnp.float32).at[0, :V].set(bout.reshape(-1))
    b_slab = jnp.concatenate([b1p, bl1, bl2, boutp], axis=0)                 # (4,128)
    return w_slab, b_slab


@jax.jit
def simple_rnn_forward_seq(x_seq, mem1, mem2, params):
    """x_seq: (T, B, V). One pallas_call runs all T steps; the grid iterates over
    chunks of C timesteps, recurrent state stays resident in VMEM scratch."""
    T, B, V = x_seq.shape
    Bp, Vp, H = BATCH_PAD, VECT_PAD, HIDDEN

    C = min(T, MAX_CHUNK)           # timesteps per grid iteration (unrolled)
    NG = -(-T // C)                 # number of chunks
    Tp = NG * C
    # TODO(synk): for caller-controlled layouts, accept pre-padded (Tp,Bp,Vp)
    # inputs to skip the wrapper-side pad/unpad HBM passes.

    w_slab, b_slab = pack_params(params)

    x_pad = jnp.zeros((Tp, Bp, Vp), jnp.float32).at[:T, :B, :V].set(x_seq)

    h1, c1 = mem1
    h2, c2 = mem2
    s0 = jnp.zeros((4, Bp, H), jnp.float32)
    s0 = s0.at[0, :B].set(h1).at[1, :B].set(c1).at[2, :B].set(h2).at[3, :B].set(c2)

    kernel = functools.partial(_simple_rnn_kernel, total_steps=T)

    out_shapes = (
        jax.ShapeDtypeStruct((Tp, Bp, Vp), jnp.float32),   # per-step log_softmax
        jax.ShapeDtypeStruct((4, Bp, H), jnp.float32),     # final packed state
    )

    out_pad, s_fin = pl.pallas_call(
        kernel,
        out_shape=out_shapes,
        grid=(NG,),
        in_specs=[
            pl.BlockSpec((C, Bp, Vp), lambda g: (g, 0, 0)),    # stream x per chunk
            pl.BlockSpec((4, Bp, H), lambda g: (0, 0, 0)),     # initial state (resident)
            pl.BlockSpec((W_ROWS, Vp), lambda g: (0, 0)),      # weight slab (resident)
            pl.BlockSpec((4, Vp), lambda g: (0, 0)),           # bias slab (resident)
        ],
        out_specs=[
            pl.BlockSpec((C, Bp, Vp), lambda g: (g, 0, 0)),    # stream output per chunk
            pl.BlockSpec((4, Bp, H), lambda g: (0, 0, 0)),     # final state (resident)
        ],
        scratch_shapes=[
            pltpu.VMEM((4, Bp, H), jnp.float32),   # carried recurrent state
            pltpu.VMEM((C, Bp, H), jnp.float32),   # per-step h2 for the epilogue
        ],
        compiler_params=pltpu.CompilerParams(
            dimension_semantics=("arbitrary",)),               # serial recurrence
    )(x_pad, s0, w_slab, b_slab)

    out = out_pad[:T, :B, :V]
    mem1_out = (s_fin[0, :B], s_fin[1, :B])
    mem2_out = (s_fin[2, :B], s_fin[3, :B])
    return out, mem1_out, mem2_out


def simple_rnn_forward(x, mem1, mem2, params):
    """Single-step API matching the PyTorch module's forward() exactly."""
    out_seq, mem1_out, mem2_out = simple_rnn_forward_seq(x[None], mem1, mem2, params)
    return out_seq[0], mem1_out, mem2_out


def ref_forward(x, mem1, mem2, params):
    """Pure-JAX reference (unfused math) for correctness checks."""
    h1, c1 = mem1
    h2, c2 = mem2
    (w1, b1, wih1, whh1, bl1, wih2, whh2, bl2, wout, bout) = params
    H = HIDDEN

    a = jnp.maximum(x @ w1 + b1, 0.0)

    def cell(inp, h, c, wih, whh, b):
        g = inp @ wih + h @ whh + b
        i = jax.nn.sigmoid(g[:, 0:H])
        f = jax.nn.sigmoid(g[:, H:2 * H])
        gg = jnp.tanh(g[:, 2 * H:3 * H])
        o = jax.nn.sigmoid(g[:, 3 * H:4 * H])
        c_new = f * c + i * gg
        return o * jnp.tanh(c_new), c_new

    h1n, c1n = cell(a, h1, c1, wih1, whh1, bl1)
    h2n, c2n = cell(h1n, h2, c2, wih2, whh2, bl2)
    logits = h2n @ wout + bout
    out = jax.nn.log_softmax(logits, axis=1)
    return out, (h1n, c1n), (h2n, c2n)


def init_params(key, hidden=HIDDEN, vect=VECT_SIZE):
    """Deterministic init matching nn.Linear / nn.LSTMCell shapes, pre-transposed."""
    ks = jax.random.split(key, 12)

    def u(k, shape, fan):
        bound = 1.0 / jnp.sqrt(jnp.float32(fan))
        return jax.random.uniform(k, shape, jnp.float32, -bound, bound)

    w1 = u(ks[0], (vect, hidden), vect)                 # lin1 weight (transposed)
    b1 = u(ks[1], (1, hidden), vect)
    wih1 = u(ks[2], (hidden, 4 * hidden), hidden)       # LSTMCell weights (transposed)
    whh1 = u(ks[3], (hidden, 4 * hidden), hidden)
    bl1 = u(ks[4], (1, 4 * hidden), hidden) + u(ks[5], (1, 4 * hidden), hidden)
    wih2 = u(ks[6], (hidden, 4 * hidden), hidden)
    whh2 = u(ks[7], (hidden, 4 * hidden), hidden)
    bl2 = u(ks[8], (1, 4 * hidden), hidden) + u(ks[9], (1, 4 * hidden), hidden)
    wout = u(ks[10], (hidden, vect), hidden)            # out weight (transposed)
    bout = u(ks[11], (1, vect), hidden)
    return (w1, b1, wih1, whh1, bl1, wih2, whh2, bl2, wout, bout)


if __name__ == "__main__":
    key = jax.random.PRNGKey(0)
    k_x, k_h1, k_c1, k_h2, k_c2, k_p = jax.random.split(key, 6)

    T = 8
    x_seq = jax.random.normal(k_x, (T, BATCH, VECT_SIZE), jnp.float32)
    mem1 = (jax.random.normal(k_h1, (BATCH, HIDDEN), jnp.float32) * 0.1,
            jax.random.normal(k_c1, (BATCH, HIDDEN), jnp.float32) * 0.1)
    mem2 = (jax.random.normal(k_h2, (BATCH, HIDDEN), jnp.float32) * 0.1,
            jax.random.normal(k_c2, (BATCH, HIDDEN), jnp.float32) * 0.1)
    params = init_params(k_p)

    # --- whole-sequence kernel: one pallas_call for all T steps ---
    out_seq, (h1, c1), (h2, c2) = simple_rnn_forward_seq(x_seq, mem1, mem2, params)
    jax.block_until_ready((out_seq, h1, c1, h2, c2))

    # pure-JAX reference, stepped
    m1, m2 = mem1, mem2
    ref_outs = []
    for t in range(T):
        o, m1, m2 = ref_forward(x_seq[t], m1, m2, params)
        ref_outs.append(o)
    ref_out_seq = jnp.stack(ref_outs)

    assert jnp.allclose(out_seq, ref_out_seq, atol=1e-5, rtol=1e-5)
    assert jnp.allclose(h1, m1[0], atol=1e-5, rtol=1e-5)
    assert jnp.allclose(c1, m1[1], atol=1e-5, rtol=1e-5)
    assert jnp.allclose(h2, m2[0], atol=1e-5, rtol=1e-5)
    assert jnp.allclose(c2, m2[1], atol=1e-5, rtol=1e-5)

    # --- single-step API (matches the PyTorch module forward) ---
    out1, sm1, sm2 = simple_rnn_forward(x_seq[0], mem1, mem2, params)
    r1, rm1, rm2 = ref_forward(x_seq[0], mem1, mem2, params)
    assert jnp.allclose(out1, r1, atol=1e-5, rtol=1e-5)
    assert jnp.allclose(sm1[0], rm1[0], atol=1e-5, rtol=1e-5)
    assert jnp.allclose(sm1[1], rm1[1], atol=1e-5, rtol=1e-5)
    assert jnp.allclose(sm2[0], rm2[0], atol=1e-5, rtol=1e-5)
    assert jnp.allclose(sm2[1], rm2[1], atol=1e-5, rtol=1e-5)

    print("KERNEL_OK")
</pallas_src>

<mosaic_0001>
module attributes {stable_mosaic.version = 11 : i64} {
  func.func @_simple_rnn_kernel(%arg0: i32, %arg1: memref<8x8x128xf32, #tpu.memory_space<vmem>>, %arg2: memref<4x8x32xf32, #tpu.memory_space<vmem>>, %arg3: memref<384x128xf32, #tpu.memory_space<vmem>>, %arg4: memref<4x128xf32, #tpu.memory_space<vmem>>, %arg5: memref<8x8x128xf32, #tpu.memory_space<vmem>>, %arg6: memref<4x8x32xf32, #tpu.memory_space<vmem>>, %arg7: memref<4x8x32xf32, #tpu.memory_space<vmem>>, %arg8: memref<8x8x32xf32, #tpu.memory_space<vmem>>) attributes {dimension_semantics = [#tpu.dimension_semantics<arbitrary>], iteration_bounds = array<i64: 1>, scalar_prefetch = 0 : i64, scratch_operands = 2 : i64, tpu.core_type = #tpu.core_type<tc>, window_params = [{transform_indices = @transform_0, window_bounds = array<i64: 8, 8, 128>}, {pipeline_mode = #tpu.pipeline_mode<synchronous>, transform_indices = @transform_1, window_bounds = array<i64: 4, 8, 32>}, {pipeline_mode = #tpu.pipeline_mode<synchronous>, transform_indices = @transform_2, window_bounds = array<i64: 384, 128>}, {pipeline_mode = #tpu.pipeline_mode<synchronous>, transform_indices = @transform_3, window_bounds = array<i64: 4, 128>}, {transform_indices = @transform_4, window_bounds = array<i64: 8, 8, 128>}, {pipeline_mode = #tpu.pipeline_mode<synchronous>, transform_indices = @transform_5, window_bounds = array<i64: 4, 8, 32>}]} {
    %c0_i32 = arith.constant 0 : i32
    %0 = arith.cmpi eq, %arg0, %c0_i32 : i32
    %1 = arith.extui %0 : i1 to i32
    %c0_i32_0 = arith.constant 0 : i32
    %2 = arith.cmpi ne, %1, %c0_i32_0 : i32
    scf.if %2 {
      %c0_112 = arith.constant 0 : index
      %c0_113 = arith.constant 0 : index
      %c0_114 = arith.constant 0 : index
      %400 = vector.load %arg2[%c0_112, %c0_113, %c0_114] : memref<4x8x32xf32, #tpu.memory_space<vmem>>, vector<4x8x32xf32>
      %c0_115 = arith.constant 0 : index
      %c0_116 = arith.constant 0 : index
      %c0_117 = arith.constant 0 : index
      %401 = vector.load %arg7[%c0_115, %c0_116, %c0_117] : memref<4x8x32xf32, #tpu.memory_space<vmem>>, vector<4x8x32xf32>
      tpu.vector_store %arg7[%c0_115, %c0_116, %c0_117], %400 {strides = array<i32>} : memref<4x8x32xf32, #tpu.memory_space<vmem>>, vector<4x8x32xf32>,
    } else {
    }
    %c0 = arith.constant 0 : index
    %c0_1 = arith.constant 0 : index
    %3 = vector.load %arg4[%c0, %c0_1] : memref<4x128xf32, #tpu.memory_space<vmem>>, vector<1x128xf32>
    %c1 = arith.constant 1 : index
    %c0_2 = arith.constant 0 : index
    %4 = vector.load %arg4[%c1, %c0_2] : memref<4x128xf32, #tpu.memory_space<vmem>>, vector<1x128xf32>
    %c2 = arith.constant 2 : index
    %c0_3 = arith.constant 0 : index
    %5 = vector.load %arg4[%c2, %c0_3] : memref<4x128xf32, #tpu.memory_space<vmem>>, vector<1x128xf32>
    %c3 = arith.constant 3 : index
    %c0_4 = arith.constant 0 : index
    %6 = vector.load %arg4[%c3, %c0_4] : memref<4x128xf32, #tpu.memory_space<vmem>>, vector<1x128xf32>
    %c0_5 = arith.constant 0 : index
    %c0_6 = arith.constant 0 : index
    %c0_7 = arith.constant 0 : index
    %7 = vector.load %arg1[%c0_5, %c0_6, %c0_7] : memref<8x8x128xf32, #tpu.memory_space<vmem>>, vector<8x8x128xf32>
    %8 = vector.shape_cast %7 : vector<8x8x128xf32> to vector<64x128xf32>
    %c0_8 = arith.constant 0 : index
    %c0_9 = arith.constant 0 : index
    %9 = vector.load %arg3[%c0_8, %c0_9] : memref<384x128xf32, #tpu.memory_space<vmem>>, vector<128x128xf32>
    %cst = arith.constant dense<0.000000e+00> : vector<64x128xf32>
    %10 = tpu.matmul %8, %9, %cst {dimension_numbers = #tpu.dot_dimension_numbers<[1], [0], [0], [1], [0, 0, 1, 1], [], []>} : vector<64x128xf32>, vector<128x128xf32>, vector<64x128xf32> -> vector<64x128xf32>
    %11 = vector.broadcast %3 : vector<1x128xf32> to vector<64x128xf32>
    %12 = arith.addf %10, %11 : vector<64x128xf32>
    %cst_10 = arith.constant 0.000000e+00 : f32
    %13 = vector.broadcast %cst_10 : f32 to vector<64x128xf32>
    %14 = arith.maximumf %12, %13 : vector<64x128xf32>
    %c128 = arith.constant 128 : index
    %c0_11 = arith.constant 0 : index
    %15 = vector.load %arg3[%c128, %c0_11] : memref<384x128xf32, #tpu.memory_space<vmem>>, vector<128x128xf32>
    %cst_12 = arith.constant dense<0.000000e+00> : vector<64x128xf32>
    %16 = tpu.matmul %14, %15, %cst_12 {dimension_numbers = #tpu.dot_dimension_numbers<[1], [0], [0], [1], [0, 0, 1, 1], [], []>} : vector<64x128xf32>, vector<128x128xf32>, vector<64x128xf32> -> vector<64x128xf32>
    %17 = vector.broadcast %4 : vector<1x128xf32> to vector<64x128xf32>
    %18 = arith.addf %16, %17 : vector<64x128xf32>
    %19 = vector.shape_cast %18 : vector<64x128xf32> to vector<8x8x128xf32>
    %c256 = arith.constant 256 : index
    %c0_13 = arith.constant 0 : index
    %20 = vector.load %arg3[%c256, %c0_13] : memref<384x128xf32, #tpu.memory_space<vmem>>, vector<32x128xf32>
    %c288 = arith.constant 288 : index
    %c0_14 = arith.constant 0 : index
    %21 = vector.load %arg3[%c288, %c0_14] : memref<384x128xf32, #tpu.memory_space<vmem>>, vector<32x128xf32>
    %c320 = arith.constant 320 : index
    %c0_15 = arith.constant 0 : index
    %22 = vector.load %arg3[%c320, %c0_15] : memref<384x128xf32, #tpu.memory_space<vmem>>, vector<32x128xf32>
    %c0_16 = arith.constant 0 : index
    %c0_17 = arith.constant 0 : index
    %c0_18 = arith.constant 0 : index
    %23 = vector.load %arg7[%c0_16, %c0_17, %c0_18] : memref<4x8x32xf32, #tpu.memory_space<vmem>>, vector<1x8x32xf32>
    %24 = vector.shape_cast %23 : vector<1x8x32xf32> to vector<8x32xf32>
    %c1_19 = arith.constant 1 : index
    %c0_20 = arith.constant 0 : index
    %c0_21 = arith.constant 0 : index
    %25 = vector.load %arg7[%c1_19, %c0_20, %c0_21] : memref<4x8x32xf32, #tpu.memory_space<vmem>>, vector<1x8x32xf32>
    %26 = vector.shape_cast %25 : vector<1x8x32xf32> to vector<8x32xf32>
    %c2_22 = arith.constant 2 : index
    %c0_23 = arith.constant 0 : index
    %c0_24 = arith.constant 0 : index
    %27 = vector.load %arg7[%c2_22, %c0_23, %c0_24] : memref<4x8x32xf32, #tpu.memory_space<vmem>>, vector<1x8x32xf32>
    %28 = vector.shape_cast %27 : vector<1x8x32xf32> to vector<8x32xf32>
    %c3_25 = arith.constant 3 : index
    %c0_26 = arith.constant 0 : index
    %c0_27 = arith.constant 0 : index
    %29 = vector.load %arg7[%c3_25, %c0_26, %c0_27] : memref<4x8x32xf32, #tpu.memory_space<vmem>>, vector<1x8x32xf32>
    %30 = vector.shape_cast %29 : vector<1x8x32xf32> to vector<8x32xf32>
    %31 = vector.extract_strided_slice %19 {offsets = [0, 0, 0], sizes = [1, 8, 128], strides = [1, 1, 1]} : vector<8x8x128xf32> to vector<1x8x128xf32>
    %32 = vector.shape_cast %31 : vector<1x8x128xf32> to vector<8x128xf32>
    %cst_28 = arith.constant dense<0.000000e+00> : vector<8x128xf32>
    %33 = tpu.matmul %24, %20, %cst_28 {dimension_numbers = #tpu.dot_dimension_numbers<[1], [0], [0], [1], [0, 0, 1, 1], [], []>} : vector<8x32xf32>, vector<32x128xf32>, vector<8x128xf32> -> vector<8x128xf32>
    %34 = arith.addf %32, %33 : vector<8x128xf32>
    %35 = arith.negf %34 : vector<8x128xf32>
    %36 = math.exp %35 : vector<8x128xf32>
    %cst_29 = arith.constant 1.000000e+00 : f32
    %37 = vector.broadcast %cst_29 : f32 to vector<8x128xf32>
    %38 = arith.addf %37, %36 : vector<8x128xf32>
    %39 = arith.divf %37, %38 : vector<8x128xf32>
    %40 = math.tanh %34 : vector<8x128xf32>
    %41 = vector.extract_strided_slice %39 {offsets = [0, 32], sizes = [8, 32], strides = [1, 1]} : vector<8x128xf32> to vector<8x32xf32>
    %42 = arith.mulf %41, %26 : vector<8x32xf32>
    %43 = vector.extract_strided_slice %39 {offsets = [0, 0], sizes = [8, 32], strides = [1, 1]} : vector<8x128xf32> to vector<8x32xf32>
    %44 = vector.extract_strided_slice %40 {offsets = [0, 64], sizes = [8, 32], strides = [1, 1]} : vector<8x128xf32> to vector<8x32xf32>
    %45 = arith.mulf %43, %44 : vector<8x32xf32>
    %46 = arith.addf %42, %45 : vector<8x32xf32>
    %47 = vector.extract_strided_slice %39 {offsets = [0, 96], sizes = [8, 32], strides = [1, 1]} : vector<8x128xf32> to vector<8x32xf32>
    %48 = math.tanh %46 : vector<8x32xf32>
    %49 = arith.mulf %47, %48 : vector<8x32xf32>
    %cst_30 = arith.constant dense<0.000000e+00> : vector<8x128xf32>
    %50 = tpu.matmul %49, %21, %cst_30 {dimension_numbers = #tpu.dot_dimension_numbers<[1], [0], [0], [1], [0, 0, 1, 1], [], []>} : vector<8x32xf32>, vector<32x128xf32>, vector<8x128xf32> -> vector<8x128xf32>
    %cst_31 = arith.constant dense<0.000000e+00> : vector<8x128xf32>
    %51 = tpu.matmul %28, %22, %cst_31 {dimension_numbers = #tpu.dot_dimension_numbers<[1], [0], [0], [1], [0, 0, 1, 1], [], []>} : vector<8x32xf32>, vector<32x128xf32>, vector<8x128xf32> -> vector<8x128xf32>
    %52 = arith.addf %50, %51 : vector<8x128xf32>
    %53 = vector.broadcast %5 : vector<1x128xf32> to vector<8x128xf32>
    %54 = arith.addf %52, %53 : vector<8x128xf32>
    %55 = arith.negf %54 : vector<8x128xf32>
    %56 = math.exp %55 : vector<8x128xf32>
    %cst_32 = arith.constant 1.000000e+00 : f32
    %57 = vector.broadcast %cst_32 : f32 to vector<8x128xf32>
    %58 = arith.addf %57, %56 : vector<8x128xf32>
    %59 = arith.divf %57, %58 : vector<8x128xf32>
    %60 = math.tanh %54 : vector<8x128xf32>
    %61 = vector.extract_strided_slice %59 {offsets = [0, 32], sizes = [8, 32], strides = [1, 1]} : vector<8x128xf32> to vector<8x32xf32>
    %62 = arith.mulf %61, %30 : vector<8x32xf32>
    %63 = vector.extract_strided_slice %59 {offsets = [0, 0], sizes = [8, 32], strides = [1, 1]} : vector<8x128xf32> to vector<8x32xf32>
    %64 = vector.extract_strided_slice %60 {offsets = [0, 64], sizes = [8, 32], strides = [1, 1]} : vector<8x128xf32> to vector<8x32xf32>
    %65 = arith.mulf %63, %64 : vector<8x32xf32>
    %66 = arith.addf %62, %65 : vector<8x32xf32>
    %67 = vector.extract_strided_slice %59 {offsets = [0, 96], sizes = [8, 32], strides = [1, 1]} : vector<8x128xf32> to vector<8x32xf32>
    %68 = math.tanh %66 : vector<8x32xf32>
    %69 = arith.mulf %67, %68 : vector<8x32xf32>
    %c0_33 = arith.constant 0 : index
    %c0_34 = arith.constant 0 : index
    %c0_35 = arith.constant 0 : index
    %70 = vector.load %arg8[%c0_33, %c0_34, %c0_35] : memref<8x8x32xf32, #tpu.memory_space<vmem>>, vector<1x8x32xf32>
    %71 = vector.shape_cast %70 : vector<1x8x32xf32> to vector<8x32xf32>
    %72 = vector.shape_cast %69 : vector<8x32xf32> to vector<1x8x32xf32>
    tpu.vector_store %arg8[%c0_33, %c0_34, %c0_35], %72 {strides = array<i32>} : memref<8x8x32xf32, #tpu.memory_space<vmem>>, vector<1x8x32xf32>,
    %73 = vector.extract_strided_slice %19 {offsets = [1, 0, 0], sizes = [1, 8, 128], strides = [1, 1, 1]} : vector<8x8x128xf32> to vector<1x8x128xf32>
    %74 = vector.shape_cast %73 : vector<1x8x128xf32> to vector<8x128xf32>
    %cst_36 = arith.constant dense<0.000000e+00> : vector<8x128xf32>
    %75 = tpu.matmul %49, %20, %cst_36 {dimension_numbers = #tpu.dot_dimension_numbers<[1], [0], [0], [1], [0, 0, 1, 1], [], []>} : vector<8x32xf32>, vector<32x128xf32>, vector<8x128xf32> -> vector<8x128xf32>
    %76 = arith.addf %74, %75 : vector<8x128xf32>
    %77 = arith.negf %76 : vector<8x128xf32>
    %78 = math.exp %77 : vector<8x128xf32>
    %cst_37 = arith.constant 1.000000e+00 : f32
    %79 = vector.broadcast %cst_37 : f32 to vector<8x128xf32>
    %80 = arith.addf %79, %78 : vector<8x128xf32>
    %81 = arith.divf %79, %80 : vector<8x128xf32>
    %82 = math.tanh %76 : vector<8x128xf32>
    %83 = vector.extract_strided_slice %81 {offsets = [0, 32], sizes = [8, 32], strides = [1, 1]} : vector<8x128xf32> to vector<8x32xf32>
    %84 = arith.mulf %83, %46 : vector<8x32xf32>
    %85 = vector.extract_strided_slice %81 {offsets = [0, 0], sizes = [8, 32], strides = [1, 1]} : vector<8x128xf32> to vector<8x32xf32>
    %86 = vector.extract_strided_slice %82 {offsets = [0, 64], sizes = [8, 32], strides = [1, 1]} : vector<8x128xf32> to vector<8x32xf32>
    %87 = arith.mulf %85, %86 : vector<8x32xf32>
    %88 = arith.addf %84, %87 : vector<8x32xf32>
    %89 = vector.extract_strided_slice %81 {offsets = [0, 96], sizes = [8, 32], strides = [1, 1]} : vector<8x128xf32> to vector<8x32xf32>
    %90 = math.tanh %88 : vector<8x32xf32>
    %91 = arith.mulf %89, %90 : vector<8x32xf32>
    %cst_38 = arith.constant dense<0.000000e+00> : vector<8x128xf32>
    %92 = tpu.matmul %91, %21, %cst_38 {dimension_numbers = #tpu.dot_dimension_numbers<[1], [0], [0], [1], [0, 0, 1, 1], [], []>} : vector<8x32xf32>, vector<32x128xf32>, vector<8x128xf32> -> vector<8x128xf32>
    %cst_39 = arith.constant dense<0.000000e+00> : vector<8x128xf32>
    %93 = tpu.matmul %69, %22, %cst_39 {dimension_numbers = #tpu.dot_dimension_numbers<[1], [0], [0], [1], [0, 0, 1, 1], [], []>} : vector<8x32xf32>, vector<32x128xf32>, vector<8x128xf32> -> vector<8x128xf32>
    %94 = arith.addf %92, %93 : vector<8x128xf32>
    %95 = vector.broadcast %5 : vector<1x128xf32> to vector<8x128xf32>
    %96 = arith.addf %94, %95 : vector<8x128xf32>
    %97 = arith.negf %96 : vector<8x128xf32>
    %98 = math.exp %97 : vector<8x128xf32>
    %cst_40 = arith.constant 1.000000e+00 : f32
    %99 = vector.broadcast %cst_40 : f32 to vector<8x128xf32>
    %100 = arith.addf %99, %98 : vector<8x128xf32>
    %101 = arith.divf %99, %100 : vector<8x128xf32>
    %102 = math.tanh %96 : vector<8x128xf32>
    %103 = vector.extract_strided_slice %101 {offsets = [0, 32], sizes = [8, 32], strides = [1, 1]} : vector<8x128xf32> to vector<8x32xf32>
    %104 = arith.mulf %103, %66 : vector<8x32xf32>
    %105 = vector.extract_strided_slice %101 {offsets = [0, 0], sizes = [8, 32], strides = [1, 1]} : vector<8x128xf32> to vector<8x32xf32>
    %106 = vector.extract_strided_slice %102 {offsets = [0, 64], sizes = [8, 32], strides = [1, 1]} : vector<8x128xf32> to vector<8x32xf32>
    %107 = arith.mulf %105, %106 : vector<8x32xf32>
    %108 = arith.addf %104, %107 : vector<8x32xf32>
    %109 = vector.extract_strided_slice %101 {offsets = [0, 96], sizes = [8, 32], strides = [1, 1]} : vector<8x128xf32> to vector<8x32xf32>
    %110 = math.tanh %108 : vector<8x32xf32>
    %111 = arith.mulf %109, %110 : vector<8x32xf32>
    %c1_41 = arith.constant 1 : index
    %c0_42 = arith.constant 0 : index
    %c0_43 = arith.constant 0 : index
    %112 = vector.load %arg8[%c1_41, %c0_42, %c0_43] : memref<8x8x32xf32, #tpu.memory_space<vmem>>, vector<1x8x32xf32>
    %113 = vector.shape_cast %112 : vector<1x8x32xf32> to vector<8x32xf32>
    %114 = vector.shape_cast %111 : vector<8x32xf32> to vector<1x8x32xf32>
    tpu.vector_store %arg8[%c1_41, %c0_42, %c0_43], %114 {strides = array<i32>} : memref<8x8x32xf32, #tpu.memory_space<vmem>>, vector<1x8x32xf32>,
    %115 = vector.extract_strided_slice %19 {offsets = [2, 0, 0], sizes = [1, 8, 128], strides = [1, 1, 1]} : vector<8x8x128xf32> to vector<1x8x128xf32>
    %116 = vector.shape_cast %115 : vector<1x8x128xf32> to vector<8x128xf32>
    %cst_44 = arith.constant dense<0.000000e+00> : vector<8x128xf32>
    %117 = tpu.matmul %91, %20, %cst_44 {dimension_numbers = #tpu.dot_dimension_numbers<[1], [0], [0], [1], [0, 0, 1, 1], [], []>} : vector<8x32xf32>, vector<32x128xf32>, vector<8x128xf32> -> vector<8x128xf32>
    %118 = arith.addf %116, %117 : vector<8x128xf32>
    %119 = arith.negf %118 : vector<8x128xf32>
    %120 = math.exp %119 : vector<8x128xf32>
    %cst_45 = arith.constant 1.000000e+00 : f32
    %121 = vector.broadcast %cst_45 : f32 to vector<8x128xf32>
    %122 = arith.addf %121, %120 : vector<8x128xf32>
    %123 = arith.divf %121, %122 : vector<8x128xf32>
    %124 = math.tanh %118 : vector<8x128xf32>
    %125 = vector.extract_strided_slice %123 {offsets = [0, 32], sizes = [8, 32], strides = [1, 1]} : vector<8x128xf32> to vector<8x32xf32>
    %126 = arith.mulf %125, %88 : vector<8x32xf32>
    %127 = vector.extract_strided_slice %123 {offsets = [0, 0], sizes = [8, 32], strides = [1, 1]} : vector<8x128xf32> to vector<8x32xf32>
    %128 = vector.extract_strided_slice %124 {offsets = [0, 64], sizes = [8, 32], strides = [1, 1]} : vector<8x128xf32> to vector<8x32xf32>
    %129 = arith.mulf %127, %128 : vector<8x32xf32>
    %130 = arith.addf %126, %129 : vector<8x32xf32>
    %131 = vector.extract_strided_slice %123 {offsets = [0, 96], sizes = [8, 32], strides = [1, 1]} : vector<8x128xf32> to vector<8x32xf32>
    %132 = math.tanh %130 : vector<8x32xf32>
    %133 = arith.mulf %131, %132 : vector<8x32xf32>
    %cst_46 = arith.constant dense<0.000000e+00> : vector<8x128xf32>
    %134 = tpu.matmul %133, %21, %cst_46 {dimension_numbers = #tpu.dot_dimension_numbers<[1], [0], [0], [1], [0, 0, 1, 1], [], []>} : vector<8x32xf32>, vector<32x128xf32>, vector<8x128xf32> -> vector<8x128xf32>
    %cst_47 = arith.constant dense<0.000000e+00> : vector<8x128xf32>
    %135 = tpu.matmul %111, %22, %cst_47 {dimension_numbers = #tpu.dot_dimension_numbers<[1], [0], [0], [1], [0, 0, 1, 1], [], []>} : vector<8x32xf32>, vector<32x128xf32>, vector<8x128xf32> -> vector<8x128xf32>
    %136 = arith.addf %134, %135 : vector<8x128xf32>
    %137 = vector.broadcast %5 : vector<1x128xf32> to vector<8x128xf32>
    %138 = arith.addf %136, %137 : vector<8x128xf32>
    %139 = arith.negf %138 : vector<8x128xf32>
    %140 = math.exp %139 : vector<8x128xf32>
    %cst_48 = arith.constant 1.000000e+00 : f32
    %141 = vector.broadcast %cst_48 : f32 to vector<8x128xf32>
    %142 = arith.addf %141, %140 : vector<8x128xf32>
    %143 = arith.divf %141, %142 : vector<8x128xf32>
    %144 = math.tanh %138 : vector<8x128xf32>
    %145 = vector.extract_strided_slice %143 {offsets = [0, 32], sizes = [8, 32], strides = [1, 1]} : vector<8x128xf32> to vector<8x32xf32>
    %146 = arith.mulf %145, %108 : vector<8x32xf32>
    %147 = vector.extract_strided_slice %143 {offsets = [0, 0], sizes = [8, 32], strides = [1, 1]} : vector<8x128xf32> to vector<8x32xf32>
    %148 = vector.extract_strided_slice %144 {offsets = [0, 64], sizes = [8, 32], strides = [1, 1]} : vector<8x128xf32> to vector<8x32xf32>
    %149 = arith.mulf %147, %148 : vector<8x32xf32>
    %150 = arith.addf %146, %149 : vector<8x32xf32>
    %151 = vector.extract_strided_slice %143 {offsets = [0, 96], sizes = [8, 32], strides = [1, 1]} : vector<8x128xf32> to vector<8x32xf32>
    %152 = math.tanh %150 : vector<8x32xf32>
    %153 = arith.mulf %151, %152 : vector<8x32xf32>
    %c2_49 = arith.constant 2 : index
    %c0_50 = arith.constant 0 : index
    %c0_51 = arith.constant 0 : index
    %154 = vector.load %arg8[%c2_49, %c0_50, %c0_51] : memref<8x8x32xf32, #tpu.memory_space<vmem>>, vector<1x8x32xf32>
    %155 = vector.shape_cast %154 : vector<1x8x32xf32> to vector<8x32xf32>
    %156 = vector.shape_cast %153 : vector<8x32xf32> to vector<1x8x32xf32>
    tpu.vector_store %arg8[%c2_49, %c0_50, %c0_51], %156 {strides = array<i32>} : memref<8x8x32xf32, #tpu.memory_space<vmem>>, vector<1x8x32xf32>,
    %157 = vector.extract_strided_slice %19 {offsets = [3, 0, 0], sizes = [1, 8, 128], strides = [1, 1, 1]} : vector<8x8x128xf32> to vector<1x8x128xf32>
    %158 = vector.shape_cast %157 : vector<1x8x128xf32> to vector<8x128xf32>
    %cst_52 = arith.constant dense<0.000000e+00> : vector<8x128xf32>
    %159 = tpu.matmul %133, %20, %cst_52 {dimension_numbers = #tpu.dot_dimension_numbers<[1], [0], [0], [1], [0, 0, 1, 1], [], []>} : vector<8x32xf32>, vector<32x128xf32>, vector<8x128xf32> -> vector<8x128xf32>
    %160 = arith.addf %158, %159 : vector<8x128xf32>
    %161 = arith.negf %160 : vector<8x128xf32>
    %162 = math.exp %161 : vector<8x128xf32>
    %cst_53 = arith.constant 1.000000e+00 : f32
    %163 = vector.broadcast %cst_53 : f32 to vector<8x128xf32>
    %164 = arith.addf %163, %162 : vector<8x128xf32>
    %165 = arith.divf %163, %164 : vector<8x128xf32>
    %166 = math.tanh %160 : vector<8x128xf32>
    %167 = vector.extract_strided_slice %165 {offsets = [0, 32], sizes = [8, 32], strides = [1, 1]} : vector<8x128xf32> to vector<8x32xf32>
    %168 = arith.mulf %167, %130 : vector<8x32xf32>
    %169 = vector.extract_strided_slice %165 {offsets = [0, 0], sizes = [8, 32], strides = [1, 1]} : vector<8x128xf32> to vector<8x32xf32>
    %170 = vector.extract_strided_slice %166 {offsets = [0, 64], sizes = [8, 32], strides = [1, 1]} : vector<8x128xf32> to vector<8x32xf32>
    %171 = arith.mulf %169, %170 : vector<8x32xf32>
    %172 = arith.addf %168, %171 : vector<8x32xf32>
    %173 = vector.extract_strided_slice %165 {offsets = [0, 96], sizes = [8, 32], strides = [1, 1]} : vector<8x128xf32> to vector<8x32xf32>
    %174 = math.tanh %172 : vector<8x32xf32>
    %175 = arith.mulf %173, %174 : vector<8x32xf32>
    %cst_54 = arith.constant dense<0.000000e+00> : vector<8x128xf32>
    %176 = tpu.matmul %175, %21, %cst_54 {dimension_numbers = #tpu.dot_dimension_numbers<[1], [0], [0], [1], [0, 0, 1, 1], [], []>} : vector<8x32xf32>, vector<32x128xf32>, vector<8x128xf32> -> vector<8x128xf32>
    %cst_55 = arith.constant dense<0.000000e+00> : vector<8x128xf32>
    %177 = tpu.matmul %153, %22, %cst_55 {dimension_numbers = #tpu.dot_dimension_numbers<[1], [0], [0], [1], [0, 0, 1, 1], [], []>} : vector<8x32xf32>, vector<32x128xf32>, vector<8x128xf32> -> vector<8x128xf32>
    %178 = arith.addf %176, %177 : vector<8x128xf32>
    %179 = vector.broadcast %5 : vector<1x128xf32> to vector<8x128xf32>
    %180 = arith.addf %178, %179 : vector<8x128xf32>
    %181 = arith.negf %180 : vector<8x128xf32>
    %182 = math.exp %181 : vector<8x128xf32>
    %cst_56 = arith.constant 1.000000e+00 : f32
    %183 = vector.broadcast %cst_56 : f32 to vector<8x128xf32>
    %184 = arith.addf %183, %182 : vector<8x128xf32>
    %185 = arith.divf %183, %184 : vector<8x128xf32>
    %186 = math.tanh %180 : vector<8x128xf32>
    %187 = vector.extract_strided_slice %185 {offsets = [0, 32], sizes = [8, 32], strides = [1, 1]} : vector<8x128xf32> to vector<8x32xf32>
    %188 = arith.mulf %187, %150 : vector<8x32xf32>
    %189 = vector.extract_strided_slice %185 {offsets = [0, 0], sizes = [8, 32], strides = [1, 1]} : vector<8x128xf32> to vector<8x32xf32>
    %190 = vector.extract_strided_slice %186 {offsets = [0, 64], sizes = [8, 32], strides = [1, 1]} : vector<8x128xf32> to vector<8x32xf32>
    %191 = arith.mulf %189, %190 : vector<8x32xf32>
    %192 = arith.addf %188, %191 : vector<8x32xf32>
    %193 = vector.extract_strided_slice %185 {offsets = [0, 96], sizes = [8, 32], strides = [1, 1]} : vector<8x128xf32> to vector<8x32xf32>
    %194 = math.tanh %192 : vector<8x32xf32>
    %195 = arith.mulf %193, %194 : vector<8x32xf32>
    %c3_57 = arith.constant 3 : index
    %c0_58 = arith.constant 0 : index
    %c0_59 = arith.constant 0 : index
    %196 = vector.load %arg8[%c3_57, %c0_58, %c0_59] : memref<8x8x32xf32, #tpu.memory_space<vmem>>, vector<1x8x32xf32>
    %197 = vector.shape_cast %196 : vector<1x8x32xf32> to vector<8x32xf32>
    %198 = vector.shape_cast %195 : vector<8x32xf32> to vector<1x8x32xf32>
    tpu.vector_store %arg8[%c3_57, %c0_58, %c0_59], %198 {strides = array<i32>} : memref<8x8x32xf32, #tpu.memory_space<vmem>>, vector<1x8x32xf32>,
    %199 = vector.extract_strided_slice %19 {offsets = [4, 0, 0], sizes = [1, 8, 128], strides = [1, 1, 1]} : vector<8x8x128xf32> to vector<1x8x128xf32>
    %200 = vector.shape_cast %199 : vector<1x8x128xf32> to vector<8x128xf32>
    %cst_60 = arith.constant dense<0.000000e+00> : vector<8x128xf32>
    %201 = tpu.matmul %175, %20, %cst_60 {dimension_numbers = #tpu.dot_dimension_numbers<[1], [0], [0], [1], [0, 0, 1, 1], [], []>} : vector<8x32xf32>, vector<32x128xf32>, vector<8x128xf32> -> vector<8x128xf32>
    %202 = arith.addf %200, %201 : vector<8x128xf32>
    %203 = arith.negf %202 : vector<8x128xf32>
    %204 = math.exp %203 : vector<8x128xf32>
    %cst_61 = arith.constant 1.000000e+00 : f32
    %205 = vector.broadcast %cst_61 : f32 to vector<8x128xf32>
    %206 = arith.addf %205, %204 : vector<8x128xf32>
    %207 = arith.divf %205, %206 : vector<8x128xf32>
    %208 = math.tanh %202 : vector<8x128xf32>
    %209 = vector.extract_strided_slice %207 {offsets = [0, 32], sizes = [8, 32], strides = [1, 1]} : vector<8x128xf32> to vector<8x32xf32>
    %210 = arith.mulf %209, %172 : vector<8x32xf32>
    %211 = vector.extract_strided_slice %207 {offsets = [0, 0], sizes = [8, 32], strides = [1, 1]} : vector<8x128xf32> to vector<8x32xf32>
    %212 = vector.extract_strided_slice %208 {offsets = [0, 64], sizes = [8, 32], strides = [1, 1]} : vector<8x128xf32> to vector<8x32xf32>
    %213 = arith.mulf %211, %212 : vector<8x32xf32>
    %214 = arith.addf %210, %213 : vector<8x32xf32>
    %215 = vector.extract_strided_slice %207 {offsets = [0, 96], sizes = [8, 32], strides = [1, 1]} : vector<8x128xf32> to vector<8x32xf32>
    %216 = math.tanh %214 : vector<8x32xf32>
    %217 = arith.mulf %215, %216 : vector<8x32xf32>
    %cst_62 = arith.constant dense<0.000000e+00> : vector<8x128xf32>
    %218 = tpu.matmul %217, %21, %cst_62 {dimension_numbers = #tpu.dot_dimension_numbers<[1], [0], [0], [1], [0, 0, 1, 1], [], []>} : vector<8x32xf32>, vector<32x128xf32>, vector<8x128xf32> -> vector<8x128xf32>
    %cst_63 = arith.constant dense<0.000000e+00> : vector<8x128xf32>
    %219 = tpu.matmul %195, %22, %cst_63 {dimension_numbers = #tpu.dot_dimension_numbers<[1], [0], [0], [1], [0, 0, 1, 1], [], []>} : vector<8x32xf32>, vector<32x128xf32>, vector<8x128xf32> -> vector<8x128xf32>
    %220 = arith.addf %218, %219 : vector<8x128xf32>
    %221 = vector.broadcast %5 : vector<1x128xf32> to vector<8x128xf32>
    %222 = arith.addf %220, %221 : vector<8x128xf32>
    %223 = arith.negf %222 : vector<8x128xf32>
    %224 = math.exp %223 : vector<8x128xf32>
    %cst_64 = arith.constant 1.000000e+00 : f32
    %225 = vector.broadcast %cst_64 : f32 to vector<8x128xf32>
    %226 = arith.addf %225, %224 : vector<8x128xf32>
    %227 = arith.divf %225, %226 : vector<8x128xf32>
    %228 = math.tanh %222 : vector<8x128xf32>
    %229 = vector.extract_strided_slice %227 {offsets = [0, 32], sizes = [8, 32], strides = [1, 1]} : vector<8x128xf32> to vector<8x32xf32>
    %230 = arith.mulf %229, %192 : vector<8x32xf32>
    %231 = vector.extract_strided_slice %227 {offsets = [0, 0], sizes = [8, 32], strides = [1, 1]} : vector<8x128xf32> to vector<8x32xf32>
    %232 = vector.extract_strided_slice %228 {offsets = [0, 64], sizes = [8, 32], strides = [1, 1]} : vector<8x128xf32> to vector<8x32xf32>
    %233 = arith.mulf %231, %232 : vector<8x32xf32>
    %234 = arith.addf %230, %233 : vector<8x32xf32>
    %235 = vector.extract_strided_slice %227 {offsets = [0, 96], sizes = [8, 32], strides = [1, 1]} : vector<8x128xf32> to vector<8x32xf32>
    %236 = math.tanh %234 : vector<8x32xf32>
    %237 = arith.mulf %235, %236 : vector<8x32xf32>
    %c4 = arith.constant 4 : index
    %c0_65 = arith.constant 0 : index
    %c0_66 = arith.constant 0 : index
    %238 = vector.load %arg8[%c4, %c0_65, %c0_66] : memref<8x8x32xf32, #tpu.memory_space<vmem>>, vector<1x8x32xf32>
    %239 = vector.shape_cast %238 : vector<1x8x32xf32> to vector<8x32xf32>
    %240 = vector.shape_cast %237 : vector<8x32xf32> to vector<1x8x32xf32>
    tpu.vector_store %arg8[%c4, %c0_65, %c0_66], %240 {strides = array<i32>} : memref<8x8x32xf32, #tpu.memory_space<vmem>>, vector<1x8x32xf32>,
    %241 = vector.extract_strided_slice %19 {offsets = [5, 0, 0], sizes = [1, 8, 128], strides = [1, 1, 1]} : vector<8x8x128xf32> to vector<1x8x128xf32>
    %242 = vector.shape_cast %241 : vector<1x8x128xf32> to vector<8x128xf32>
    %cst_67 = arith.constant dense<0.000000e+00> : vector<8x128xf32>
    %243 = tpu.matmul %217, %20, %cst_67 {dimension_numbers = #tpu.dot_dimension_numbers<[1], [0], [0], [1], [0, 0, 1, 1], [], []>} : vector<8x32xf32>, vector<32x128xf32>, vector<8x128xf32> -> vector<8x128xf32>
    %244 = arith.addf %242, %243 : vector<8x128xf32>
    %245 = arith.negf %244 : vector<8x128xf32>
    %246 = math.exp %245 : vector<8x128xf32>
    %cst_68 = arith.constant 1.000000e+00 : f32
    %247 = vector.broadcast %cst_68 : f32 to vector<8x128xf32>
    %248 = arith.addf %247, %246 : vector<8x128xf32>
    %249 = arith.divf %247, %248 : vector<8x128xf32>
    %250 = math.tanh %244 : vector<8x128xf32>
    %251 = vector.extract_strided_slice %249 {offsets = [0, 32], sizes = [8, 32], strides = [1, 1]} : vector<8x128xf32> to vector<8x32xf32>
    %252 = arith.mulf %251, %214 : vector<8x32xf32>
    %253 = vector.extract_strided_slice %249 {offsets = [0, 0], sizes = [8, 32], strides = [1, 1]} : vector<8x128xf32> to vector<8x32xf32>
    %254 = vector.extract_strided_slice %250 {offsets = [0, 64], sizes = [8, 32], strides = [1, 1]} : vector<8x128xf32> to vector<8x32xf32>
    %255 = arith.mulf %253, %254 : vector<8x32xf32>
    %256 = arith.addf %252, %255 : vector<8x32xf32>
    %257 = vector.extract_strided_slice %249 {offsets = [0, 96], sizes = [8, 32], strides = [1, 1]} : vector<8x128xf32> to vector<8x32xf32>
    %258 = math.tanh %256 : vector<8x32xf32>
    %259 = arith.mulf %257, %258 : vector<8x32xf32>
    %cst_69 = arith.constant dense<0.000000e+00> : vector<8x128xf32>
    %260 = tpu.matmul %259, %21, %cst_69 {dimension_numbers = #tpu.dot_dimension_numbers<[1], [0], [0], [1], [0, 0, 1, 1], [], []>} : vector<8x32xf32>, vector<32x128xf32>, vector<8x128xf32> -> vector<8x128xf32>
    %cst_70 = arith.constant dense<0.000000e+00> : vector<8x128xf32>
    %261 = tpu.matmul %237, %22, %cst_70 {dimension_numbers = #tpu.dot_dimension_numbers<[1], [0], [0], [1], [0, 0, 1, 1], [], []>} : vector<8x32xf32>, vector<32x128xf32>, vector<8x128xf32> -> vector<8x128xf32>
    %262 = arith.addf %260, %261 : vector<8x128xf32>
    %263 = vector.broadcast %5 : vector<1x128xf32> to vector<8x128xf32>
    %264 = arith.addf %262, %263 : vector<8x128xf32>
    %265 = arith.negf %264 : vector<8x128xf32>
    %266 = math.exp %265 : vector<8x128xf32>
    %cst_71 = arith.constant 1.000000e+00 : f32
    %267 = vector.broadcast %cst_71 : f32 to vector<8x128xf32>
    %268 = arith.addf %267, %266 : vector<8x128xf32>
    %269 = arith.divf %267, %268 : vector<8x128xf32>
    %270 = math.tanh %264 : vector<8x128xf32>
    %271 = vector.extract_strided_slice %269 {offsets = [0, 32], sizes = [8, 32], strides = [1, 1]} : vector<8x128xf32> to vector<8x32xf32>
    %272 = arith.mulf %271, %234 : vector<8x32xf32>
    %273 = vector.extract_strided_slice %269 {offsets = [0, 0], sizes = [8, 32], strides = [1, 1]} : vector<8x128xf32> to vector<8x32xf32>
    %274 = vector.extract_strided_slice %270 {offsets = [0, 64], sizes = [8, 32], strides = [1, 1]} : vector<8x128xf32> to vector<8x32xf32>
    %275 = arith.mulf %273, %274 : vector<8x32xf32>
    %276 = arith.addf %272, %275 : vector<8x32xf32>
    %277 = vector.extract_strided_slice %269 {offsets = [0, 96], sizes = [8, 32], strides = [1, 1]} : vector<8x128xf32> to vector<8x32xf32>
    %278 = math.tanh %276 : vector<8x32xf32>
    %279 = arith.mulf %277, %278 : vector<8x32xf32>
    %c5 = arith.constant 5 : index
    %c0_72 = arith.constant 0 : index
    %c0_73 = arith.constant 0 : index
    %280 = vector.load %arg8[%c5, %c0_72, %c0_73] : memref<8x8x32xf32, #tpu.memory_space<vmem>>, vector<1x8x32xf32>
    %281 = vector.shape_cast %280 : vector<1x8x32xf32> to vector<8x32xf32>
    %282 = vector.shape_cast %279 : vector<8x32xf32> to vector<1x8x32xf32>
    tpu.vector_store %arg8[%c5, %c0_72, %c0_73], %282 {strides = array<i32>} : memref<8x8x32xf32, #tpu.memory_space<vmem>>, vector<1x8x32xf32>,
    %283 = vector.extract_strided_slice %19 {offsets = [6, 0, 0], sizes = [1, 8, 128], strides = [1, 1, 1]} : vector<8x8x128xf32> to vector<1x8x128xf32>
    %284 = vector.shape_cast %283 : vector<1x8x128xf32> to vector<8x128xf32>
    %cst_74 = arith.constant dense<0.000000e+00> : vector<8x128xf32>
    %285 = tpu.matmul %259, %20, %cst_74 {dimension_numbers = #tpu.dot_dimension_numbers<[1], [0], [0], [1], [0, 0, 1, 1], [], []>} : vector<8x32xf32>, vector<32x128xf32>, vector<8x128xf32> -> vector<8x128xf32>
    %286 = arith.addf %284, %285 : vector<8x128xf32>
    %287 = arith.negf %286 : vector<8x128xf32>
    %288 = math.exp %287 : vector<8x128xf32>
    %cst_75 = arith.constant 1.000000e+00 : f32
    %289 = vector.broadcast %cst_75 : f32 to vector<8x128xf32>
    %290 = arith.addf %289, %288 : vector<8x128xf32>
    %291 = arith.divf %289, %290 : vector<8x128xf32>
    %292 = math.tanh %286 : vector<8x128xf32>
    %293 = vector.extract_strided_slice %291 {offsets = [0, 32], sizes = [8, 32], strides = [1, 1]} : vector<8x128xf32> to vector<8x32xf32>
    %294 = arith.mulf %293, %256 : vector<8x32xf32>
    %295 = vector.extract_strided_slice %291 {offsets = [0, 0], sizes = [8, 32], strides = [1, 1]} : vector<8x128xf32> to vector<8x32xf32>
    %296 = vector.extract_strided_slice %292 {offsets = [0, 64], sizes = [8, 32], strides = [1, 1]} : vector<8x128xf32> to vector<8x32xf32>
    %297 = arith.mulf %295, %296 : vector<8x32xf32>
    %298 = arith.addf %294, %297 : vector<8x32xf32>
    %299 = vector.extract_strided_slice %291 {offsets = [0, 96], sizes = [8, 32], strides = [1, 1]} : vector<8x128xf32> to vector<8x32xf32>
    %300 = math.tanh %298 : vector<8x32xf32>
    %301 = arith.mulf %299, %300 : vector<8x32xf32>
    %cst_76 = arith.constant dense<0.000000e+00> : vector<8x128xf32>
    %302 = tpu.matmul %301, %21, %cst_76 {dimension_numbers = #tpu.dot_dimension_numbers<[1], [0], [0], [1], [0, 0, 1, 1], [], []>} : vector<8x32xf32>, vector<32x128xf32>, vector<8x128xf32> -> vector<8x128xf32>
    %cst_77 = arith.constant dense<0.000000e+00> : vector<8x128xf32>
    %303 = tpu.matmul %279, %22, %cst_77 {dimension_numbers = #tpu.dot_dimension_numbers<[1], [0], [0], [1], [0, 0, 1, 1], [], []>} : vector<8x32xf32>, vector<32x128xf32>, vector<8x128xf32> -> vector<8x128xf32>
    %304 = arith.addf %302, %303 : vector<8x128xf32>
    %305 = vector.broadcast %5 : vector<1x128xf32> to vector<8x128xf32>
    %306 = arith.addf %304, %305 : vector<8x128xf32>
    %307 = arith.negf %306 : vector<8x128xf32>
    %308 = math.exp %307 : vector<8x128xf32>
    %cst_78 = arith.constant 1.000000e+00 : f32
    %309 = vector.broadcast %cst_78 : f32 to vector<8x128xf32>
    %310 = arith.addf %309, %308 : vector<8x128xf32>
    %311 = arith.divf %309, %310 : vector<8x128xf32>
    %312 = math.tanh %306 : vector<8x128xf32>
    %313 = vector.extract_strided_slice %311 {offsets = [0, 32], sizes = [8, 32], strides = [1, 1]} : vector<8x128xf32> to vector<8x32xf32>
    %314 = arith.mulf %313, %276 : vector<8x32xf32>
    %315 = vector.extract_strided_slice %311 {offsets = [0, 0], sizes = [8, 32], strides = [1, 1]} : vector<8x128xf32> to vector<8x32xf32>
    %316 = vector.extract_strided_slice %312 {offsets = [0, 64], sizes = [8, 32], strides = [1, 1]} : vector<8x128xf32> to vector<8x32xf32>
    %317 = arith.mulf %315, %316 : vector<8x32xf32>
    %318 = arith.addf %314, %317 : vector<8x32xf32>
    %319 = vector.extract_strided_slice %311 {offsets = [0, 96], sizes = [8, 32], strides = [1, 1]} : vector<8x128xf32> to vector<8x32xf32>
    %320 = math.tanh %318 : vector<8x32xf32>
    %321 = arith.mulf %319, %320 : vector<8x32xf32>
    %c6 = arith.constant 6 : index
    %c0_79 = arith.constant 0 : index
    %c0_80 = arith.constant 0 : index
    %322 = vector.load %arg8[%c6, %c0_79, %c0_80] : memref<8x8x32xf32, #tpu.memory_space<vmem>>, vector<1x8x32xf32>
    %323 = vector.shape_cast %322 : vector<1x8x32xf32> to vector<8x32xf32>
    %324 = vector.shape_cast %321 : vector<8x32xf32> to vector<1x8x32xf32>
    tpu.vector_store %arg8[%c6, %c0_79, %c0_80], %324 {strides = array<i32>} : memref<8x8x32xf32, #tpu.memory_space<vmem>>, vector<1x8x32xf32>,
    %325 = vector.extract_strided_slice %19 {offsets = [7, 0, 0], sizes = [1, 8, 128], strides = [1, 1, 1]} : vector<8x8x128xf32> to vector<1x8x128xf32>
    %326 = vector.shape_cast %325 : vector<1x8x128xf32> to vector<8x128xf32>
    %cst_81 = arith.constant dense<0.000000e+00> : vector<8x128xf32>
    %327 = tpu.matmul %301, %20, %cst_81 {dimension_numbers = #tpu.dot_dimension_numbers<[1], [0], [0], [1], [0, 0, 1, 1], [], []>} : vector<8x32xf32>, vector<32x128xf32>, vector<8x128xf32> -> vector<8x128xf32>
    %328 = arith.addf %326, %327 : vector<8x128xf32>
    %329 = arith.negf %328 : vector<8x128xf32>
    %330 = math.exp %329 : vector<8x128xf32>
    %cst_82 = arith.constant 1.000000e+00 : f32
    %331 = vector.broadcast %cst_82 : f32 to vector<8x128xf32>
    %332 = arith.addf %331, %330 : vector<8x128xf32>
    %333 = arith.divf %331, %332 : vector<8x128xf32>
    %334 = math.tanh %328 : vector<8x128xf32>
    %335 = vector.extract_strided_slice %333 {offsets = [0, 32], sizes = [8, 32], strides = [1, 1]} : vector<8x128xf32> to vector<8x32xf32>
    %336 = arith.mulf %335, %298 : vector<8x32xf32>
    %337 = vector.extract_strided_slice %333 {offsets = [0, 0], sizes = [8, 32], strides = [1, 1]} : vector<8x128xf32> to vector<8x32xf32>
    %338 = vector.extract_strided_slice %334 {offsets = [0, 64], sizes = [8, 32], strides = [1, 1]} : vector<8x128xf32> to vector<8x32xf32>
    %339 = arith.mulf %337, %338 : vector<8x32xf32>
    %340 = arith.addf %336, %339 : vector<8x32xf32>
    %341 = vector.extract_strided_slice %333 {offsets = [0, 96], sizes = [8, 32], strides = [1, 1]} : vector<8x128xf32> to vector<8x32xf32>
    %342 = math.tanh %340 : vector<8x32xf32>
    %343 = arith.mulf %341, %342 : vector<8x32xf32>
    %cst_83 = arith.constant dense<0.000000e+00> : vector<8x128xf32>
    %344 = tpu.matmul %343, %21, %cst_83 {dimension_numbers = #tpu.dot_dimension_numbers<[1], [0], [0], [1], [0, 0, 1, 1], [], []>} : vector<8x32xf32>, vector<32x128xf32>, vector<8x128xf32> -> vector<8x128xf32>
    %cst_84 = arith.constant dense<0.000000e+00> : vector<8x128xf32>
    %345 = tpu.matmul %321, %22, %cst_84 {dimension_numbers = #tpu.dot_dimension_numbers<[1], [0], [0], [1], [0, 0, 1, 1], [], []>} : vector<8x32xf32>, vector<32x128xf32>, vector<8x128xf32> -> vector<8x128xf32>
    %346 = arith.addf %344, %345 : vector<8x128xf32>
    %347 = vector.broadcast %5 : vector<1x128xf32> to vector<8x128xf32>
    %348 = arith.addf %346, %347 : vector<8x128xf32>
    %349 = arith.negf %348 : vector<8x128xf32>
    %350 = math.exp %349 : vector<8x128xf32>
    %cst_85 = arith.constant 1.000000e+00 : f32
    %351 = vector.broadcast %cst_85 : f32 to vector<8x128xf32>
    %352 = arith.addf %351, %350 : vector<8x128xf32>
    %353 = arith.divf %351, %352 : vector<8x128xf32>
    %354 = math.tanh %348 : vector<8x128xf32>
    %355 = vector.extract_strided_slice %353 {offsets = [0, 32], sizes = [8, 32], strides = [1, 1]} : vector<8x128xf32> to vector<8x32xf32>
    %356 = arith.mulf %355, %318 : vector<8x32xf32>
    %357 = vector.extract_strided_slice %353 {offsets = [0, 0], sizes = [8, 32], strides = [1, 1]} : vector<8x128xf32> to vector<8x32xf32>
    %358 = vector.extract_strided_slice %354 {offsets = [0, 64], sizes = [8, 32], strides = [1, 1]} : vector<8x128xf32> to vector<8x32xf32>
    %359 = arith.mulf %357, %358 : vector<8x32xf32>
    %360 = arith.addf %356, %359 : vector<8x32xf32>
    %361 = vector.extract_strided_slice %353 {offsets = [0, 96], sizes = [8, 32], strides = [1, 1]} : vector<8x128xf32> to vector<8x32xf32>
    %362 = math.tanh %360 : vector<8x32xf32>
    %363 = arith.mulf %361, %362 : vector<8x32xf32>
    %c7 = arith.constant 7 : index
    %c0_86 = arith.constant 0 : index
    %c0_87 = arith.constant 0 : index
    %364 = vector.load %arg8[%c7, %c0_86, %c0_87] : memref<8x8x32xf32, #tpu.memory_space<vmem>>, vector<1x8x32xf32>
    %365 = vector.shape_cast %364 : vector<1x8x32xf32> to vector<8x32xf32>
    %366 = vector.shape_cast %363 : vector<8x32xf32> to vector<1x8x32xf32>
    tpu.vector_store %arg8[%c7, %c0_86, %c0_87], %366 {strides = array<i32>} : memref<8x8x32xf32, #tpu.memory_space<vmem>>, vector<1x8x32xf32>,
    %c0_88 = arith.constant 0 : index
    %c0_89 = arith.constant 0 : index
    %c0_90 = arith.constant 0 : index
    %367 = vector.load %arg7[%c0_88, %c0_89, %c0_90] : memref<4x8x32xf32, #tpu.memory_space<vmem>>, vector<1x8x32xf32>
    %368 = vector.shape_cast %367 : vector<1x8x32xf32> to vector<8x32xf32>
    %369 = vector.shape_cast %343 : vector<8x32xf32> to vector<1x8x32xf32>
    tpu.vector_store %arg7[%c0_88, %c0_89, %c0_90], %369 {strides = array<i32>} : memref<4x8x32xf32, #tpu.memory_space<vmem>>, vector<1x8x32xf32>,
    %c1_91 = arith.constant 1 : index
    %c0_92 = arith.constant 0 : index
    %c0_93 = arith.constant 0 : index
    %370 = vector.load %arg7[%c1_91, %c0_92, %c0_93] : memref<4x8x32xf32, #tpu.memory_space<vmem>>, vector<1x8x32xf32>
    %371 = vector.shape_cast %370 : vector<1x8x32xf32> to vector<8x32xf32>
    %372 = vector.shape_cast %340 : vector<8x32xf32> to vector<1x8x32xf32>
    tpu.vector_store %arg7[%c1_91, %c0_92, %c0_93], %372 {strides = array<i32>} : memref<4x8x32xf32, #tpu.memory_space<vmem>>, vector<1x8x32xf32>,
    %c2_94 = arith.constant 2 : index
    %c0_95 = arith.constant 0 : index
    %c0_96 = arith.constant 0 : index
    %373 = vector.load %arg7[%c2_94, %c0_95, %c0_96] : memref<4x8x32xf32, #tpu.memory_space<vmem>>, vector<1x8x32xf32>
    %374 = vector.shape_cast %373 : vector<1x8x32xf32> to vector<8x32xf32>
    %375 = vector.shape_cast %363 : vector<8x32xf32> to vector<1x8x32xf32>
    tpu.vector_store %arg7[%c2_94, %c0_95, %c0_96], %375 {strides = array<i32>} : memref<4x8x32xf32, #tpu.memory_space<vmem>>, vector<1x8x32xf32>,
    %c3_97 = arith.constant 3 : index
    %c0_98 = arith.constant 0 : index
    %c0_99 = arith.constant 0 : index
    %376 = vector.load %arg7[%c3_97, %c0_98, %c0_99] : memref<4x8x32xf32, #tpu.memory_space<vmem>>, vector<1x8x32xf32>
    %377 = vector.shape_cast %376 : vector<1x8x32xf32> to vector<8x32xf32>
    %378 = vector.shape_cast %360 : vector<8x32xf32> to vector<1x8x32xf32>
    tpu.vector_store %arg7[%c3_97, %c0_98, %c0_99], %378 {strides = array<i32>} : memref<4x8x32xf32, #tpu.memory_space<vmem>>, vector<1x8x32xf32>,
    %c0_100 = arith.constant 0 : index
    %c0_101 = arith.constant 0 : index
    %c0_102 = arith.constant 0 : index
    %379 = vector.load %arg8[%c0_100, %c0_101, %c0_102] : memref<8x8x32xf32, #tpu.memory_space<vmem>>, vector<8x8x32xf32>
    %380 = vector.shape_cast %379 : vector<8x8x32xf32> to vector<64x32xf32>
    %c352 = arith.constant 352 : index
    %c0_103 = arith.constant 0 : index
    %381 = vector.load %arg3[%c352, %c0_103] : memref<384x128xf32, #tpu.memory_space<vmem>>, vector<32x128xf32>
    %cst_104 = arith.constant dense<0.000000e+00> : vector<64x128xf32>
    %382 = tpu.matmul %380, %381, %cst_104 {dimension_numbers = #tpu.dot_dimension_numbers<[1], [0], [0], [1], [0, 0, 1, 1], [], []>} : vector<64x32xf32>, vector<32x128xf32>, vector<64x128xf32> -> vector<64x128xf32>
    %383 = vector.broadcast %6 : vector<1x128xf32> to vector<64x128xf32>
    %384 = arith.addf %382, %383 : vector<64x128xf32>
    %cst_105 = arith.constant dense<0xFF800000> : vector<64xf32>
    %385 = vector.multi_reduction <maximumf>, %384, %cst_105 [1] : vector<64x128xf32> to vector<64xf32>
    %386 = vector.shape_cast %385 : vector<64xf32> to vector<64x1xf32>
    %387 = vector.broadcast %386 : vector<64x1xf32> to vector<64x128xf32>
    %388 = arith.subf %384, %387 : vector<64x128xf32>
    %389 = math.exp %388 : vector<64x128xf32>
    %cst_106 = arith.constant dense<0.000000e+00> : vector<64xf32>
    %390 = vector.multi_reduction <add>, %389, %cst_106 [1] : vector<64x128xf32> to vector<64xf32>
    %391 = vector.shape_cast %390 : vector<64xf32> to vector<64x1xf32>
    %392 = math.log %391 : vector<64x1xf32>
    %393 = vector.broadcast %392 : vector<64x1xf32> to vector<64x128xf32>
    %394 = arith.subf %388, %393 : vector<64x128xf32>
    %395 = vector.shape_cast %394 : vector<64x128xf32> to vector<8x8x128xf32>
    %c0_107 = arith.constant 0 : index
    %c0_108 = arith.constant 0 : index
    %c0_109 = arith.constant 0 : index
    %396 = vector.load %arg5[%c0_107, %c0_108, %c0_109] : memref<8x8x128xf32, #tpu.memory_space<vmem>>, vector<8x8x128xf32>
    tpu.vector_store %arg5[%c0_107, %c0_108, %c0_109], %395 {strides = array<i32>} : memref<8x8x128xf32, #tpu.memory_space<vmem>>, vector<8x8x128xf32>,
    %c0_i32_110 = arith.constant 0 : i32
    %397 = arith.cmpi eq, %arg0, %c0_i32_110 : i32
    %398 = arith.extui %397 : i1 to i32
    %c0_i32_111 = arith.constant 0 : i32
    %399 = arith.cmpi ne, %398, %c0_i32_111 : i32
    scf.if %399 {
      %c0_112 = arith.constant 0 : index
      %c0_113 = arith.constant 0 : index
      %c0_114 = arith.constant 0 : index
      %400 = vector.load %arg7[%c0_112, %c0_113, %c0_114] : memref<4x8x32xf32, #tpu.memory_space<vmem>>, vector<4x8x32xf32>
      %c0_115 = arith.constant 0 : index
      %c0_116 = arith.constant 0 : index
      %c0_117 = arith.constant 0 : index
      %401 = vector.load %arg6[%c0_115, %c0_116, %c0_117] : memref<4x8x32xf32, #tpu.memory_space<vmem>>, vector<4x8x32xf32>
      tpu.vector_store %arg6[%c0_115, %c0_116, %c0_117], %400 {strides = array<i32>} : memref<4x8x32xf32, #tpu.memory_space<vmem>>, vector<4x8x32xf32>,
    } else {
    }
    return
  }
  func.func @transform_0(%arg0: i32) -> (i32, i32, i32) {
    %c0_i32 = arith.constant 0 : i32
    %c0_i32_0 = arith.constant 0 : i32
    %c0_i32_1 = arith.constant 0 : i32
    return %arg0, %c0_i32, %c0_i32_0 : i32, i32, i32
  }
  func.func @transform_1(%arg0: i32) -> (i32, i32, i32) {
    %c0_i32 = arith.constant 0 : i32
    %c0_i32_0 = arith.constant 0 : i32
    %c0_i32_1 = arith.constant 0 : i32
    %c0_i32_2 = arith.constant 0 : i32
    return %c0_i32, %c0_i32_0, %c0_i32_1 : i32, i32, i32
  }
  func.func @transform_2(%arg0: i32) -> (i32, i32) {
    %c0_i32 = arith.constant 0 : i32
    %c0_i32_0 = arith.constant 0 : i32
    %c0_i32_1 = arith.constant 0 : i32
    return %c0_i32, %c0_i32_0 : i32, i32
  }
  func.func @transform_3(%arg0: i32) -> (i32, i32) {
    %c0_i32 = arith.constant 0 : i32
    %c0_i32_0 = arith.constant 0 : i32
    %c0_i32_1 = arith.constant 0 : i32
    return %c0_i32, %c0_i32_0 : i32, i32
  }
  func.func @transform_4(%arg0: i32) -> (i32, i32, i32) {
    %c0_i32 = arith.constant 0 : i32
    %c0_i32_0 = arith.constant 0 : i32
    %c0_i32_1 = arith.constant 0 : i32
    return %arg0, %c0_i32, %c0_i32_0 : i32, i32, i32
  }
  func.func @transform_5(%arg0: i32) -> (i32, i32, i32) {
    %c0_i32 = arith.constant 0 : i32
    %c0_i32_0 = arith.constant 0 : i32
    %c0_i32_1 = arith.constant 0 : i32
    %c0_i32_2 = arith.constant 0 : i32
    return %c0_i32, %c0_i32_0, %c0_i32_1 : i32, i32, i32
  }
}

</mosaic_0001>

<bundles_post_ra>
// kernel: simple_rnn_forward_seq.1
= control target key start
LH: loop header
LB: loop body
LE: loop exit
PB: predicated region body
PF: predicated region fallthrough
CT: control target
= control target key end

     0   :  { %v3568_v40 = vmov 0.0   ;;  %vm27_vm0 = vcmask 261120   ;;  %vm3569_vm1 = vmmov 0   ;;  %s3570_s13 = smov 64   ;;  %s3571_s14 = smov 32   ;;  %s4378_s2 = inlined_call_operand.vmem [shape: f32[384,128], index: 2, kind: input, shape index: {}]   ;;  %s4379_s0 = inlined_call_operand.vmem [shape: f32[8,8,128], index: 0, kind: input, shape index: {}]   ;;  %s4380_s1 = inlined_call_operand.vmem [shape: f32[4,8,32], index: 1, kind: input, shape index: {}]   ;;  %s4381_s3 = inlined_call_operand.vmem [shape: f32[4,128], index: 3, kind: input, shape index: {}]   ;;  %s4382_s5 = inlined_call_operand.vmem [shape: f32[4,8,32], index: 5, kind: output, shape index: {1}]   ;;  %s4383_s4 = inlined_call_operand.vmem [shape: f32[8,8,128], index: 4, kind: output, shape index: {0}]  }
   0x1   :  { %v59_v0 = vld [vmem:[%s4378_s2 + $0x78] sm:$0xff]  ;;  %v58_v1 = vld [vmem:[%s4378_s2 + $0x70] sm:$0xff]  ;;  %v57_v2 = vld [vmem:[%s4378_s2 + $0x68] sm:$0xff]  ;;  %s3572_s9 = smov 96  }
   0x2   :  { %3018 = vmatprep.subr.mxu0 %v59_v0  ;;  %v56_v3 = vld [vmem:[%s4378_s2 + $0x60] sm:$0xff]  ;;  %v55_v5 = vld [vmem:[%s4378_s2 + $0x58] sm:$0xff]  ;;  %v54_v6 = vld [vmem:[%s4378_s2 + $0x50] sm:$0xff] }
   0x3   :  { %3019 = vmatpush3.msra.mxu0 %v59_v0  ;;  %v36_v4 = vld [vmem:[%s4379_s0] sm:$0xff]  ;;  %v192_v7 = vld [vmem:[%s4378_s2 + $0xf8] sm:$0xff]  ;;  %v191_v8 = vld [vmem:[%s4378_s2 + $0xf0] sm:$0xff] }
   0x4   :  { %3020 = vmatprep.subr.mxu0 %v58_v1  ;;  %3050 = vmatprep.mubr.f32.mxu0 %v36_v4  ;;  %v53_v9 = vld [vmem:[%s4378_s2 + $0x48] sm:$0xff]  ;;  %v52_v11 = vld [vmem:[%s4378_s2 + $0x40] sm:$0xff]  ;;  %v51_v13 = vld [vmem:[%s4378_s2 + $0x38] sm:$0xff] }
   0x5   :  { %3021 = vmatpush3.msra.mxu0 %v58_v1  ;;  %3062 = vmatprep.subr.mxu1 %v192_v7  ;;  %v190_v10 = vld [vmem:[%s4378_s2 + $0xe8] sm:$0xff]  ;;  %v189_v12 = vld [vmem:[%s4378_s2 + $0xe0] sm:$0xff]  ;;  %v188_v14 = vld [vmem:[%s4378_s2 + $0xd8] sm:$0xff] }
   0x6   :  { %3022 = vmatprep.subr.mxu0 %v57_v2  ;;  %3063 = vmatpush3.msra.mxu1 %v192_v7  ;;  %v50_v15 = vld [vmem:[%s4378_s2 + $0x30] sm:$0xff]  ;;  %v49_v17 = vld [vmem:[%s4378_s2 + $0x28] sm:$0xff]  ;;  %v48_v19 = vld [vmem:[%s4378_s2 + $0x20] sm:$0xff] }
   0x7   :  { %3023 = vmatpush3.msra.mxu0 %v57_v2  ;;  %3064 = vmatprep.subr.mxu1 %v191_v8  ;;  %v187_v16 = vld [vmem:[%s4378_s2 + $0xd0] sm:$0xff]  ;;  %v186_v18 = vld [vmem:[%s4378_s2 + $0xc8] sm:$0xff]  ;;  %v185_v20 = vld [vmem:[%s4378_s2 + $0xc0] sm:$0xff] }
   0x8   :  { %3024 = vmatprep.subr.mxu0 %v56_v3  ;;  %3065 = vmatpush3.msra.mxu1 %v191_v8  ;;  %v47_v21 = vld [vmem:[%s4378_s2 + $0x18] sm:$0xff]  ;;  %v46_v23 = vld [vmem:[%s4378_s2 + $0x10] sm:$0xff]  ;;  %v45_v25 = vld [vmem:[%s4378_s2 + $0x8] sm:$0xff] }
   0x9   :  { %3025 = vmatpush3.msra.mxu0 %v56_v3  ;;  %3066 = vmatprep.subr.mxu1 %v190_v10  ;;  %v184_v22 = vld [vmem:[%s4378_s2 + $0xb8] sm:$0xff]  ;;  %v183_v24 = vld [vmem:[%s4378_s2 + $0xb0] sm:$0xff]  ;;  %v182_v26 = vld [vmem:[%s4378_s2 + $0xa8] sm:$0xff] }
   0xa   :  { %3026 = vmatprep.subr.mxu0 %v55_v5  ;;  %3067 = vmatpush3.msra.mxu1 %v190_v10  ;;  %v44_v27 = vld [vmem:[%s4378_s2] sm:$0xff]  ;;  %v37_v29 = vld [vmem:[%s4379_s0 + $0x8] sm:$0xff]  ;;  %v180_v30 = vld [vmem:[%s4378_s2 + $0x98] sm:$0xff] }
   0xb   :  { %3027 = vmatpush3.msra.mxu0 %v55_v5  ;;  %3068 = vmatprep.subr.mxu1 %v189_v12  ;;  %v181_v28 = vld [vmem:[%s4378_s2 + $0xa0] sm:$0xff]  ;;  %v38_v31 = vld [vmem:[%s4379_s0 + $0x10] sm:$0xff]  ;;  %v39_v32 = vld [vmem:[%s4379_s0 + $0x18] sm:$0xff] }
   0xc   :  { %3028 = vmatprep.subr.mxu0 %v54_v6  ;;  %3069 = vmatpush3.msra.mxu1 %v189_v12  ;;  %v40_v33 = vld [vmem:[%s4379_s0 + $0x20] sm:$0xff]  ;;  %v41_v34 = vld [vmem:[%s4379_s0 + $0x28] sm:$0xff]  ;;  %v42_v35 = vld [vmem:[%s4379_s0 + $0x30] sm:$0xff] }
   0xd   :  { %3029 = vmatpush3.msra.mxu0 %v54_v6  ;;  %3070 = vmatprep.subr.mxu1 %v188_v14  ;;  %v43_v36 = vld [vmem:[%s4379_s0 + $0x38] sm:$0xff]  ;;  %v179_v37 = vld [vmem:[%s4378_s2 + $0x90] sm:$0xff]  ;;  %v178_v38 = vld [vmem:[%s4378_s2 + $0x88] sm:$0xff] }
   0xe   :  { %3030 = vmatprep.subr.mxu0 %v53_v9  ;;  %3071 = vmatpush3.msra.mxu1 %v188_v14  ;;  %v177_v39 = vld [vmem:[%s4378_s2 + $0x80] sm:$0xff]  ;;  %v3737_v52 = vld [vmem:[%s4378_s2 + $0x118] sm:$0xff]  ;;  %v3742_v55 = vld [vmem:[%s4378_s2 + $0x110] sm:$0xff] }
   0xf   :  { %3031 = vmatpush3.msra.mxu0 %v53_v9  ;;  %3072 = vmatprep.subr.mxu1 %v187_v16  ;;  %v23_v41 = vld [vmem:[%s4380_s1] sm:$0xff]  ;;  %v3749_v60 = vld [vmem:[%s4378_s2 + $0x108] sm:$0xff] }
  0x10   :  { %3032 = vmatprep.subr.mxu0 %v52_v11  ;;  %3073 = vmatpush3.msra.mxu1 %v187_v16  ;;  %28 = vst.msk [vmem:[#allocation2] sm:$0xff] %vm27_vm0, %v23_v41  ;;  %v2786_v42 = vld [vmem:[%s4381_s3] ss:$0 sm:$0xff]  ;;  %v24_v8 = vld [vmem:[%s4380_s1 + $0x8] sm:$0xff]  ;;  %v2787_v9 = vld [vmem:[%s4381_s3 + $0x1] ss:$0 sm:$0xff] }
  0x11   :  { %3033 = vmatpush3.msra.mxu0 %v52_v11  ;;  %3074 = vmatprep.subr.mxu1 %v186_v18  ;;  %v3756_v63 = vld [vmem:[%s4378_s2 + $0x100] sm:$0xff]  ;;  %29 = vst.msk [vmem:[#allocation2 + $0x8] sm:$0xff] %vm27_vm0, %v24_v8 }
  0x12   :  { %3034 = vmatprep.subr.mxu0 %v51_v13  ;;  %3075 = vmatpush3.msra.mxu1 %v186_v18 }
  0x13   :  { %3035 = vmatpush3.msra.mxu0 %v51_v13  ;;  %3076 = vmatprep.subr.mxu1 %v185_v20 }
  0x14   :  { %3036 = vmatprep.subr.mxu0 %v50_v15  ;;  %3077 = vmatpush3.msra.mxu1 %v185_v20 }
  0x15   :  { %3037 = vmatpush3.msra.mxu0 %v50_v15  ;;  %3078 = vmatprep.subr.mxu1 %v184_v22 }
  0x16   :  { %3038 = vmatprep.subr.mxu0 %v49_v17  ;;  %3079 = vmatpush3.msra.mxu1 %v184_v22 }
  0x17   :  { %3039 = vmatpush3.msra.mxu0 %v49_v17  ;;  %3080 = vmatprep.subr.mxu1 %v183_v24  ;;  %v314_v7 = vld [vmem:[#allocation2] sm:$0xff] }
  0x18   :  { %3040 = vmatprep.subr.mxu0 %v48_v19  ;;  %3081 = vmatpush3.msra.mxu1 %v183_v24 }
  0x19   :  { %3041 = vmatpush3.msra.mxu0 %v48_v19  ;;  %3082 = vmatprep.subr.mxu1 %v182_v26 }
  0x1a   :  { %3042 = vmatprep.subr.mxu0 %v47_v21  ;;  %3083 = vmatpush3.msra.mxu1 %v182_v26 }
  0x1b   :  { %3043 = vmatpush3.msra.mxu0 %v47_v21  ;;  %3084 = vmatprep.subr.mxu1 %v181_v28 }
  0x1c   :  { %3044 = vmatprep.subr.mxu0 %v46_v23  ;;  %3085 = vmatpush3.msra.mxu1 %v181_v28 }
  0x1d   :  { %3045 = vmatpush3.msra.mxu0 %v46_v23  ;;  %3086 = vmatprep.subr.mxu1 %v180_v30 }
  0x1e   :  { %3046 = vmatprep.subr.mxu0 %v45_v25  ;;  %3087 = vmatpush3.msra.mxu1 %v180_v30  ;;  %v316_v30 = vld [vmem:[#allocation2 + $0x8] sm:$0xff] }
  0x1f   :  { %3047 = vmatpush3.msra.mxu0 %v45_v25  ;;  %3088 = vmatprep.subr.mxu1 %v179_v37 }
  0x20   :  { %3048 = vmatprep.subr.mxu0 %v44_v27  ;;  %3089 = vmatpush3.msra.mxu1 %v179_v37 }
  0x21   :  { %3049 = vmatpush3.msra.mxu0 %v44_v27  ;;  %3090 = vmatprep.subr.mxu1 %v178_v38 }
  0x22   :  { %3051 = vmatmul.mubr.f32.vlgmr.msra.gmra.mxu0 %v37_v29  ;;  %3091 = vmatpush3.msra.mxu1 %v178_v38 }
  0x23   :  { %3053 = vmatprep.mubr.f32.mxu0 %v38_v31  ;;  %3092 = vmatprep.subr.mxu1 %v177_v39 }
  0x24   :  { %3093 = vmatpush3.msra.mxu1 %v177_v39  ;;  %3128 = vmatprep.subr.mxu0 %v3568_v40 }
  0x25   :  { %3106 = vmatprep.subr.mxu1 %v3568_v40 }
  0x26   :  { %3054 = vmatmul.mubr.f32.gmra.mxu0 %v39_v32 }
  0x27   :  { %3056 = vmatprep.mubr.f32.mxu0 %v40_v33 }
  0x2a   :  { %3057 = vmatmul.mubr.f32.gmra.mxu0 %v41_v34 }
  0x2b   :  { %3059 = vmatprep.mubr.f32.mxu0 %v42_v35 }
  0x2e   :  { %3060 = vmatmul.mubr.f32.gmra.mxu0 %v43_v36 }
  0x2f   :  { %3136 = vmatprep.mubr.msk.f32.mxu0 %vm3569_vm1, %v3568_v40 }
  0xe2   :  { %v3052_v43 = vpop.f32.mrf.mxu0 }
  0xe3   :  { %v136_v44 = vadd.f32 %v3052_v43, %v2786_v42  ;;  %v3802_v43 = vld [vmem:[%s4378_s2 + $0x158] sm:$0xff] }
  0xe4   :  { %v130_v45 = vpop.f32.mrf.mxu0 }
  0xe5   :  { %v131_v46 = vadd.f32 %v2786_v42, %v130_v45  ;;  %v170_v49 = vmax.f32 %v136_v44, 0.0  ;;  %v3807_v44 = vld [vmem:[%s4378_s2 + $0x150] sm:$0xff] }
  0xe6   :  { %v3055_v47 = vpop.f32.mrf.mxu0  ;;  %v3814_v45 = vld [vmem:[%s4378_s2 + $0x130] sm:$0xff] }
  0xe7   :  { %v169_v48 = vmax.f32 %v131_v46, 0.0  ;;  %v146_v50 = vadd.f32 %v3055_v47, %v2786_v42  ;;  %v3821_v46 = vld [vmem:[%s4378_s2 + $0x148] sm:$0xff] }
  0xe8   :  { %v140_v51 = vpop.f32.mrf.mxu0  ;;  %v3826_v47 = vld [vmem:[%s4378_s2 + $0x128] sm:$0xff] }
  0xe9   :  { %v141_v53 = vadd.f32 %v2786_v42, %v140_v51  ;;  %3094 = vmatprep.mubr.f32.mxu1 %v169_v48  ;;  %v172_v57 = vmax.f32 %v146_v50, 0.0  ;;  %v25_v48 = vld [vmem:[%s4380_s1 + $0x10] sm:$0xff]  ;;  %v3844_v50 = vld [vmem:[%s4378_s2 + $0x120] sm:$0xff] }
  0xea   :  { %v3058_v54 = vpop.f32.mrf.mxu0  ;;  %3095 = vmatmul.mubr.f32.vlgmr.msra.gmra.mxu1 %v170_v49  ;;  %30 = vst.msk [vmem:[#allocation2 + $0x10] sm:$0xff] %vm27_vm0, %v25_v48  ;;  %v3838_v49 = vld [vmem:[%s4378_s2 + $0x140] sm:$0xff] }
  0xeb   :  { %v171_v56 = vmax.f32 %v141_v53, 0.0  ;;  %3107 = vmatpush3.msra.mxu1 %v3737_v52  ;;  %v156_v58 = vadd.f32 %v3058_v54, %v2786_v42 }
  0xec   :  { %v150_v59 = vpop.f32.mrf.mxu0  ;;  %3108 = vmatprep.subr.mxu1 %v3568_v40 }
  0xed   :  { %v151_v61 = vadd.f32 %v2786_v42, %v150_v59  ;;  %3097 = vmatprep.mubr.f32.mxu1 %v171_v56  ;;  %3109 = vmatpush3.msra.mxu1 %v3742_v55  ;;  %v174_v1 = vmax.f32 %v156_v58, 0.0 }
  0xee   :  { %v3061_v62 = vpop.f32.mrf.mxu0  ;;  %3098 = vmatmul.mubr.f32.gmra.mxu1 %v172_v57  ;;  %3110 = vmatprep.subr.mxu1 %v3568_v40 }
  0xef   :  { %v173_v0 = vmax.f32 %v151_v61, 0.0  ;;  %3111 = vmatpush3.msra.mxu1 %v3749_v60  ;;  %v166_v2 = vadd.f32 %v3061_v62, %v2786_v42  ;;  %v26_v61 = vld [vmem:[%s4380_s1 + $0x18] sm:$0xff]  ;;  %v3896_v62 = vld [vmem:[%s4381_s3 + $0x2] ss:$0 sm:$0xff] }
  0xf0   :  { %v160_v3 = vpop.f32.mrf.mxu0  ;;  %3112 = vmatprep.subr.mxu1 %v3568_v40  ;;  %31 = vst.msk [vmem:[#allocation2 + $0x18] sm:$0xff] %vm27_vm0, %v26_v61 }
  0xf1   :  { %v161_v4 = vadd.f32 %v2786_v42, %v160_v3  ;;  %3100 = vmatprep.mubr.f32.mxu1 %v173_v0  ;;  %3113 = vmatpush3.msra.mxu1 %v3756_v63  ;;  %v176_v6 = vmax.f32 %v166_v2, 0.0  ;;  %v3797_v42 = vld [vmem:[%s4378_s2 + $0x138] sm:$0xff]  ;;  %v318_v53 = vld [vmem:[#allocation2 + $0x10] sm:$0xff] }
  0xf2   :  { %3101 = vmatmul.mubr.f32.gmra.mxu1 %v174_v1  ;;  %3117 = vmatprep.subr.mxu1 %v3568_v40 }
  0xf3   :  { %v175_v5 = vmax.f32 %v161_v4, 0.0  ;;  %3129 = vmatpush3.msra.mxu0 %v3797_v42 }
  0xf4   :  { %3130 = vmatprep.subr.mxu0 %v3568_v40 }
  0xf5   :  { %3103 = vmatprep.mubr.f32.mxu1 %v175_v5  ;;  %3131 = vmatpush3.msra.mxu0 %v3814_v45 }
  0xf6   :  { %3104 = vmatmul.mubr.f32.gmra.mxu1 %v176_v6  ;;  %3132 = vmatprep.subr.mxu0 %v3568_v40 }
  0xf7   :  { %3114 = vmatprep.mubr.msk.f32.mxu1 %vm3569_vm1, %v3568_v40  ;;  %3133 = vmatpush3.msra.mxu0 %v3826_v47 }
  0xf8   :  { %3134 = vmatprep.subr.mxu0 %v3568_v40 }
  0xf9   :  { %3135 = vmatpush3.msra.mxu0 %v3844_v50 }
  0xfa   :  { %3115 = vmatmul.mubr.msk.f32.vlgmr.msra.gmra.mxu1 %vm27_vm0, %v314_v7  ;;  %3150 = vmatprep.subr.mxu0 %v3568_v40 }
  0xfb   :  { %3125 = vmatprep.mubr.msk.f32.mxu1 %vm3569_vm1, %v3568_v40  ;;  %3118 = vmatpush3.msra.mxu1 %v3802_v43 }
  0xfc   :  { %3119 = vmatprep.subr.mxu1 %v3568_v40 }
  0xfd   :  { %3120 = vmatpush3.msra.mxu1 %v3807_v44 }
  0xfe   :  { %3121 = vmatprep.subr.mxu1 %v3568_v40 }
  0xff   :  { %3122 = vmatpush3.msra.mxu1 %v3821_v46 }
 0x100   :  { %3123 = vmatprep.subr.mxu1 %v3568_v40 }
 0x101   :  { %3124 = vmatpush3.msra.mxu1 %v3838_v49 }
 0x102   :  { %3139 = vmatprep.subr.mxu1 %v3568_v40  ;;  %3126 = vmatmul.mubr.msk.f32.vlgmr.msra.gmra.mxu1 %vm27_vm0, %v318_v53 }
 0x103   :  { %3140 = vmatpush3.msra.mxu1 %v3737_v52  ;;  %3147 = vmatprep.mubr.msk.f32.mxu1 %vm3569_vm1, %v3568_v40 }
 0x104   :  { %3141 = vmatprep.subr.mxu1 %v3568_v40 }
 0x105   :  { %3142 = vmatpush3.msra.mxu1 %v3742_v55 }
 0x106   :  { %3143 = vmatprep.subr.mxu1 %v3568_v40 }
 0x107   :  { %3144 = vmatpush3.msra.mxu1 %v3749_v60 }
 0x108   :  { %3145 = vmatprep.subr.mxu1 %v3568_v40 }
 0x109   :  { %3146 = vmatpush3.msra.mxu1 %v3756_v63 }
 0x10a   :  { %3161 = vmatprep.subr.mxu1 %v3568_v40 }
 0x1aa   :  { %v3096_v10 = vpop.f32.mrf.mxu1 }
 0x1ab   :  { %v3774_v11 = vadd.f32 %v3096_v10, %v2787_v9 }
 0x1ac   :  { %v263_v12 = vpop.f32.mrf.mxu1 }
 0x1ad   :  { %v264_v24 = vadd.f32 %v2787_v9, %v263_v12 }
 0x1ae   :  { %v3099_v13 = vpop.f32.mrf.mxu1 }
 0x1af   :  { %v3776_v14 = vadd.f32 %v3099_v13, %v2787_v9 }
 0x1b0   :  { %v273_v15 = vpop.f32.mrf.mxu1 }
 0x1b1   :  { %v3778_v16 = vadd.f32 %v2787_v9, %v273_v15 }
 0x1b2   :  { %v3102_v17 = vpop.f32.mrf.mxu1 }
 0x1b3   :  { %v3780_v18 = vadd.f32 %v3102_v17, %v2787_v9 }
 0x1b4   :  { %v283_v19 = vpop.f32.mrf.mxu1 }
 0x1b5   :  { %v3782_v20 = vadd.f32 %v2787_v9, %v283_v19 }
 0x1b6   :  { %v3105_v21 = vpop.f32.mrf.mxu1 }
 0x1b7   :  { %v3784_v22 = vadd.f32 %v3105_v21, %v2787_v9 }
 0x1b8   :  { %v293_v23 = vpop.f32.mrf.mxu1 }
 0x1b9   :  { %v3786_v25 = vadd.f32 %v2787_v9, %v293_v23  ;;  %v320_v9 = vld [vmem:[#allocation2 + $0x18] sm:$0xff] }
 0x1ba   :  { %v391_v26 = vpop.f32.mrf.mxu1 }
 0x1bb   :  { %v395_v27 = vadd.f32 %v391_v26, %v264_v24 }
 0x1bc   :  { %v3116_v28 = vpop.f32.mrf.mxu1 }
 0x1bd   :  { %3395 = vtanh.f32 %v395_v27  ;;  %v2789_v31 = vmul.f32 -1.442695, %v395_v27 }
 0x1bf   :  { %3397 = vpow2.f32 %v2789_v31 }
 0x1c2   :  { %v493_v57 = vpop.f32.mrf.mxu1 }
 0x1c4   :  { %v3127_v58 = vpop.f32.mrf.mxu1 }
 0x1ca   :  { %v3396_v29 = vpop.eup %3395 }
 0x1cb   :  { %409 = vrot.lane.b32.xlu0 %v3396_v29, %s3570_s13 }
 0x1cc   :  { %v3398_v32 = vpop.eup %3397 }
 0x1cd   :  { %v399_v33 = vadd.f32 1.0, %v3398_v32 }
 0x1cf   :  { %404 = vrot.lane.b32.xlu0 %v316_v30, %s3571_s14  ;;  %3399 = vrcp.f32 %v399_v33 }
 0x1dc   :  { %v3400_v34 = vpop.eup %3399 }
 0x23d   :  { %v410_v35 = vpop.permute.xlu0 %409 }
 0x23e   :  { %v412_v36 = vmul.f32 %v3400_v34, %v410_v35 }
 0x240   :  { %414 = vrot.lane.b32.xlu1 %v412_v36, %s3571_s14 }
 0x241   :  { %v405_v37 = vpop.permute.xlu0 %404 }
 0x242   :  { %v407_v38 = vmul.f32 %v3400_v34, %v405_v37 }
 0x2b2   :  { %v415_v39 = vpop.permute.xlu1 %414 }
 0x2b3   :  { %v3791_v41 = vadd.f32 %v415_v39, %v407_v38 }
 0x2b5   :  { %3401 = vtanh.f32 %v3791_v41 }
 0x2c2   :  { %v3402_v51 = vpop.eup %3401 }
 0x2c3   :  { %420 = vrot.lane.b32.xlu1 %v3402_v51, %s3570_s13 }
 0x335   :  { %v421_v54 = vpop.permute.xlu1 %420 }
 0x336   :  { %v423_v56 = vmul.f32 %v3400_v34, %v421_v54 }
 0x338   :  { %498 = vrot.lane.b32.xlu0 %v423_v56, %s3571_s14 }
 0x3aa   :  { %v499_v59 = vpop.permute.xlu0 %498 }
 0x3ab   :  { %3137 = vmatmul.mubr.msk.f32.vlgmr.msra.gmra.mxu0 %vm27_vm0, %v499_v59  ;;  %3148 = vmatmul.mubr.msk.f32.vlgmr.msra.gmra.mxu1 %vm27_vm0, %v499_v59 }
 0x3ac   :  { %3162 = vmatpush3.msra.mxu1 %v3797_v42  ;;  %3151 = vmatpush3.msra.mxu0 %v3802_v43 }
 0x3ad   :  { %3163 = vmatprep.subr.mxu1 %v3568_v40  ;;  %3152 = vmatprep.subr.mxu0 %v3568_v40 }
 0x3ae   :  { %3164 = vmatpush3.msra.mxu1 %v3814_v45  ;;  %3153 = vmatpush3.msra.mxu0 %v3807_v44 }
 0x3af   :  { %3165 = vmatprep.subr.mxu1 %v3568_v40  ;;  %3154 = vmatprep.subr.mxu0 %v3568_v40 }
 0x3b0   :  { %3166 = vmatpush3.msra.mxu1 %v3826_v47  ;;  %3155 = vmatpush3.msra.mxu0 %v3821_v46 }
 0x3b1   :  { %3167 = vmatprep.subr.mxu1 %v3568_v40  ;;  %3156 = vmatprep.subr.mxu0 %v3568_v40 }
 0x3b2   :  { %3168 = vmatpush3.msra.mxu1 %v3844_v50  ;;  %3169 = vmatprep.mubr.msk.f32.mxu1 %vm3569_vm1, %v3568_v40 }
 0x3b3   :  { %3157 = vmatpush3.msra.mxu0 %v3838_v49  ;;  %3158 = vmatprep.mubr.msk.f32.mxu0 %vm3569_vm1, %v3568_v40 }
 0x3b4   :  { %3172 = vmatprep.subr.mxu0 %v3568_v40  ;;  %3183 = vmatprep.subr.mxu1 %v3568_v40 }
 0x46b   :  { %v568_v0 = vpop.f32.mrf.mxu0  ;;  %v676_v1 = vpop.f32.mrf.mxu1 }
 0x46c   :  { %v569_v2 = vadd.f32 %v568_v0, %v493_v57  ;;  %v680_v3 = vadd.f32 %v676_v1, %v3774_v11 }
 0x46d   :  { %v3138_v4 = vpop.f32.mrf.mxu0  ;;  %v3149_v5 = vpop.f32.mrf.mxu1 }
 0x46e   :  { %v576_v6 = vadd.f32 %v3896_v62, %v569_v2  ;;  %3403 = vtanh.f32 %v680_v3  ;;  %v2795_v10 = vmul.f32 -1.442695, %v680_v3 }
 0x470   :  { %3405 = vtanh.f32 %v576_v6  ;;  %v2793_v12 = vmul.f32 -1.442695, %v576_v6 }
 0x471   :  { %3407 = vpow2.f32 %v2795_v10 }
 0x472   :  { %3409 = vpow2.f32 %v2793_v12 }
 0x47b   :  { %v3404_v7 = vpop.eup %3403 }
 0x47c   :  { %690 = vrot.lane.b32.xlu0 %v3404_v7, %s3570_s13 }
 0x47d   :  { %v3406_v8 = vpop.eup %3405 }
 0x47e   :  { %590 = vrot.lane.b32.xlu1 %v3406_v8, %s3570_s13  ;;  %v3408_v11 = vpop.eup %3407 }
 0x47f   :  { %v3410_v13 = vpop.eup %3409  ;;  %v684_v15 = vadd.f32 1.0, %v3408_v11 }
 0x480   :  { %v580_v17 = vadd.f32 1.0, %v3410_v13 }
 0x481   :  { %3411 = vrcp.f32 %v684_v15 }
 0x482   :  { %585 = vrot.lane.b32.xlu1 %v320_v9, %s3571_s14  ;;  %3413 = vrcp.f32 %v580_v17 }
 0x48e   :  { %v3412_v19 = vpop.eup %3411 }
 0x48f   :  { %v3414_v24 = vpop.eup %3413  ;;  %v688_v29 = vmul.f32 %v3412_v19, %v3791_v41 }
 0x4ee   :  { %v691_v21 = vpop.permute.xlu0 %690 }
 0x4ef   :  { %v693_v23 = vmul.f32 %v3412_v19, %v691_v21 }
 0x4f0   :  { %v591_v26 = vpop.permute.xlu1 %590 }
 0x4f1   :  { %v593_v27 = vmul.f32 %v3414_v24, %v591_v26  ;;  %695 = vrot.lane.b32.xlu1 %v693_v23, %s3571_s14 }
 0x4f3   :  { %595 = vrot.lane.b32.xlu0 %v593_v27, %s3571_s14 }
 0x4f4   :  { %v586_v28 = vpop.permute.xlu1 %585 }
 0x4f5   :  { %v588_v31 = vmul.f32 %v3414_v24, %v586_v28 }
 0x563   :  { %v696_v30 = vpop.permute.xlu1 %695 }
 0x564   :  { %v3906_v32 = vadd.f32 %v696_v30, %v688_v29 }
 0x565   :  { %v596_v33 = vpop.permute.xlu0 %595 }
 0x566   :  { %3415 = vtanh.f32 %v3906_v32  ;;  %v3909_v34 = vadd.f32 %v596_v33, %v588_v31 }
 0x568   :  { %3417 = vtanh.f32 %v3909_v34 }
 0x573   :  { %v3416_v35 = vpop.eup %3415 }
 0x574   :  { %701 = vrot.lane.b32.xlu1 %v3416_v35, %s3570_s13 }
 0x575   :  { %v3418_v36 = vpop.eup %3417 }
 0x576   :  { %601 = vrot.lane.b32.xlu0 %v3418_v36, %s3570_s13 }
 0x5e6   :  { %v702_v37 = vpop.permute.xlu1 %701 }
 0x5e7   :  { %v704_v38 = vmul.f32 %v3412_v19, %v702_v37 }
 0x5e8   :  { %v602_v39 = vpop.permute.xlu0 %601 }
 0x5e9   :  { %v604_v41 = vmul.f32 %v3414_v24, %v602_v39  ;;  %778 = vrot.lane.b32.xlu1 %v704_v38, %s3571_s14 }
 0x5eb   :  { %606 = vrot.lane.b32.xlu0 %v604_v41, %s3571_s14 }
 0x65b   :  { %v779_v48 = vpop.permute.xlu1 %778 }
 0x65c   :  { %3170 = vmatmul.mubr.msk.f32.vlgmr.msra.gmra.mxu1 %vm27_vm0, %v779_v48 }
 0x65d   :  { %v607_v51 = vpop.permute.xlu0 %606  ;;  %3184 = vmatpush3.msra.mxu1 %v3802_v43  ;;  %3191 = vmatprep.mubr.msk.f32.mxu1 %vm3569_vm1, %v3568_v40 }
 0x65e   :  { %609 = vst.msk [vmem:[#allocation3] sm:$0xff] %vm27_vm0, %v607_v51  ;;  %3159 = vmatmul.mubr.msk.f32.vlgmr.msra.gmra.mxu0 %vm27_vm0, %v607_v51  ;;  %3185 = vmatprep.subr.mxu1 %v3568_v40 }
 0x65f   :  { %3173 = vmatpush3.msra.mxu0 %v3737_v52  ;;  %3180 = vmatprep.mubr.msk.f32.mxu0 %vm3569_vm1, %v3568_v40 }
 0x660   :  { %3174 = vmatprep.subr.mxu0 %v3568_v40  ;;  %3186 = vmatpush3.msra.mxu1 %v3807_v44 }
 0x661   :  { %3175 = vmatpush3.msra.mxu0 %v3742_v55  ;;  %3187 = vmatprep.subr.mxu1 %v3568_v40 }
 0x662   :  { %3176 = vmatprep.subr.mxu0 %v3568_v40  ;;  %3188 = vmatpush3.msra.mxu1 %v3821_v46 }
 0x663   :  { %3177 = vmatpush3.msra.mxu0 %v3749_v60  ;;  %3189 = vmatprep.subr.mxu1 %v3568_v40 }
 0x664   :  { %3178 = vmatprep.subr.mxu0 %v3568_v40  ;;  %3190 = vmatpush3.msra.mxu1 %v3838_v49 }
 0x665   :  { %3179 = vmatpush3.msra.mxu0 %v3756_v63  ;;  %3205 = vmatprep.subr.mxu1 %v3568_v40 }
 0x666   :  { %3181 = vmatmul.mubr.msk.f32.vlgmr.msra.gmra.mxu0 %vm27_vm0, %v779_v48  ;;  %3194 = vmatprep.subr.mxu0 %v3568_v40 }
 0x667   :  { %3195 = vmatpush3.msra.mxu0 %v3797_v42  ;;  %3202 = vmatprep.mubr.msk.f32.mxu0 %vm3569_vm1, %v3568_v40 }
 0x668   :  { %3196 = vmatprep.subr.mxu0 %v3568_v40 }
 0x669   :  { %3197 = vmatpush3.msra.mxu0 %v3814_v45 }
 0x66a   :  { %3198 = vmatprep.subr.mxu0 %v3568_v40 }
 0x66b   :  { %3199 = vmatpush3.msra.mxu0 %v3826_v47 }
 0x66c   :  { %3200 = vmatprep.subr.mxu0 %v3568_v40 }
 0x66d   :  { %3201 = vmatpush3.msra.mxu0 %v3844_v50 }
 0x66e   :  { %3216 = vmatprep.subr.mxu0 %v3568_v40 }
 0x71c   :  { %v848_v53 = vpop.f32.mrf.mxu1 }
 0x71e   :  { %v773_v54 = vpop.f32.mrf.mxu0  ;;  %v3171_v56 = vpop.f32.mrf.mxu1 }
 0x71f   :  { %v849_v57 = vadd.f32 %v848_v53, %v773_v54 }
 0x720   :  { %v3160_v58 = vpop.f32.mrf.mxu0 }
 0x721   :  { %v852_v59 = vadd.f32 %v3896_v62, %v849_v57 }
 0x723   :  { %3419 = vtanh.f32 %v852_v59  ;;  %v2798_v4 = vmul.f32 -1.442695, %v852_v59 }
 0x726   :  { %v949_v61 = vpop.f32.mrf.mxu0 }
 0x727   :  { %v953_v0 = vadd.f32 %v949_v61, %v3778_v16 }
 0x728   :  { %v3182_v1 = vpop.f32.mrf.mxu0 }
 0x729   :  { %3421 = vtanh.f32 %v953_v0  ;;  %v2800_v5 = vmul.f32 -1.442695, %v953_v0 }
 0x72a   :  { %3423 = vpow2.f32 %v2798_v4 }
 0x72b   :  { %3425 = vpow2.f32 %v2800_v5 }
 0x730   :  { %v3420_v2 = vpop.eup %3419 }
 0x731   :  { %862 = vrot.lane.b32.xlu0 %v3420_v2, %s3570_s13 }
 0x736   :  { %v3422_v3 = vpop.eup %3421 }
 0x737   :  { %963 = vrot.lane.b32.xlu1 %v3422_v3, %s3570_s13  ;;  %v3424_v6 = vpop.eup %3423 }
 0x738   :  { %v856_v7 = vadd.f32 1.0, %v3424_v6  ;;  %v3426_v8 = vpop.eup %3425 }
 0x739   :  { %v957_v9 = vadd.f32 1.0, %v3426_v8 }
 0x73a   :  { %3427 = vrcp.f32 %v856_v7 }
 0x73b   :  { %3429 = vrcp.f32 %v957_v9 }
 0x747   :  { %v3428_v10 = vpop.eup %3427 }
 0x748   :  { %v3430_v11 = vpop.eup %3429  ;;  %v860_v17 = vmul.f32 %v3428_v10, %v3909_v34 }
 0x749   :  { %v961_v23 = vmul.f32 %v3430_v11, %v3906_v32 }
 0x7a3   :  { %v863_v16 = vpop.permute.xlu0 %862 }
 0x7a4   :  { %v865_v12 = vmul.f32 %v3428_v10, %v863_v16 }
 0x7a6   :  { %867 = vrot.lane.b32.xlu0 %v865_v12, %s3571_s14 }
 0x7a9   :  { %v964_v13 = vpop.permute.xlu1 %963 }
 0x7aa   :  { %v966_v15 = vmul.f32 %v3430_v11, %v964_v13 }
 0x7ac   :  { %968 = vrot.lane.b32.xlu1 %v966_v15, %s3571_s14 }
 0x818   :  { %v868_v19 = vpop.permute.xlu0 %867 }
 0x819   :  { %v3957_v21 = vadd.f32 %v868_v19, %v860_v17 }
 0x81b   :  { %3431 = vtanh.f32 %v3957_v21 }
 0x81e   :  { %v969_v24 = vpop.permute.xlu1 %968 }
 0x81f   :  { %v3961_v26 = vadd.f32 %v969_v24, %v961_v23 }
 0x821   :  { %3433 = vtanh.f32 %v3961_v26 }
 0x828   :  { %v3432_v27 = vpop.eup %3431 }
 0x829   :  { %873 = vrot.lane.b32.xlu0 %v3432_v27, %s3570_s13 }
 0x82e   :  { %v3434_v28 = vpop.eup %3433 }
 0x82f   :  { %974 = vrot.lane.b32.xlu1 %v3434_v28, %s3570_s13 }
 0x89b   :  { %v874_v29 = vpop.permute.xlu0 %873 }
 0x89c   :  { %v876_v30 = vmul.f32 %v3428_v10, %v874_v29 }
 0x89e   :  { %878 = vrot.lane.b32.xlu0 %v876_v30, %s3571_s14 }
 0x8a1   :  { %v975_v31 = vpop.permute.xlu1 %974 }
 0x8a2   :  { %v977_v33 = vmul.f32 %v3430_v11, %v975_v31 }
 0x8a4   :  { %1051 = vrot.lane.b32.xlu1 %v977_v33, %s3571_s14 }
 0x910   :  { %v879_v32 = vpop.permute.xlu0 %878 }
 0x911   :  { %882 = vst.msk [vmem:[#allocation3 + $0x8] sm:$0xff] %vm27_vm0, %v879_v32  ;;  %3192 = vmatmul.mubr.msk.f32.vlgmr.msra.gmra.mxu1 %vm27_vm0, %v879_v32 }
 0x912   :  { %3206 = vmatpush3.msra.mxu1 %v3737_v52  ;;  %3213 = vmatprep.mubr.msk.f32.mxu1 %vm3569_vm1, %v3568_v40 }
 0x913   :  { %3207 = vmatprep.subr.mxu1 %v3568_v40 }
 0x914   :  { %3208 = vmatpush3.msra.mxu1 %v3742_v55 }
 0x915   :  { %3209 = vmatprep.subr.mxu1 %v3568_v40 }
 0x916   :  { %3210 = vmatpush3.msra.mxu1 %v3749_v60  ;;  %v1052_v34 = vpop.permute.xlu1 %1051 }
 0x917   :  { %3203 = vmatmul.mubr.msk.f32.vlgmr.msra.gmra.mxu0 %vm27_vm0, %v1052_v34  ;;  %3211 = vmatprep.subr.mxu1 %v3568_v40 }
 0x918   :  { %3212 = vmatpush3.msra.mxu1 %v3756_v63  ;;  %3217 = vmatpush3.msra.mxu0 %v3802_v43 }
 0x919   :  { %3214 = vmatmul.mubr.msk.f32.vlgmr.msra.gmra.mxu1 %vm27_vm0, %v1052_v34  ;;  %3227 = vmatprep.subr.mxu1 %v3568_v40 }
 0x91a   :  { %3218 = vmatprep.subr.mxu0 %v3568_v40  ;;  %3228 = vmatpush3.msra.mxu1 %v3797_v42 }
 0x91b   :  { %3219 = vmatpush3.msra.mxu0 %v3807_v44  ;;  %3229 = vmatprep.subr.mxu1 %v3568_v40 }
 0x91c   :  { %3220 = vmatprep.subr.mxu0 %v3568_v40  ;;  %3230 = vmatpush3.msra.mxu1 %v3814_v45 }
 0x91d   :  { %3221 = vmatpush3.msra.mxu0 %v3821_v46  ;;  %3231 = vmatprep.subr.mxu1 %v3568_v40 }
 0x91e   :  { %3222 = vmatprep.subr.mxu0 %v3568_v40  ;;  %3232 = vmatpush3.msra.mxu1 %v3826_v47 }
 0x91f   :  { %3223 = vmatpush3.msra.mxu0 %v3838_v49  ;;  %3233 = vmatprep.subr.mxu1 %v3568_v40 }
 0x920   :  { %3234 = vmatpush3.msra.mxu1 %v3844_v50  ;;  %3235 = vmatprep.mubr.msk.f32.mxu1 %vm3569_vm1, %v3568_v40 }
 0x921   :  { %3224 = vmatprep.mubr.msk.f32.mxu0 %vm3569_vm1, %v3568_v40  ;;  %3238 = vmatprep.subr.mxu0 %v3568_v40 }
 0x922   :  { %3249 = vmatprep.subr.mxu1 %v3568_v40 }
 0x9d1   :  { %v1046_v35 = vpop.f32.mrf.mxu1 }
 0x9d3   :  { %v3193_v36 = vpop.f32.mrf.mxu1 }
 0x9d7   :  { %v1121_v37 = vpop.f32.mrf.mxu0 }
 0x9d8   :  { %v1122_v38 = vadd.f32 %v1121_v37, %v1046_v35 }
 0x9d9   :  { %v3204_v39 = vpop.f32.mrf.mxu0  ;;  %v1222_v41 = vpop.f32.mrf.mxu1 }
 0x9da   :  { %v1125_v48 = vadd.f32 %v3896_v62, %v1122_v38  ;;  %v1226_v51 = vadd.f32 %v1222_v41, %v3776_v14 }
 0x9db   :  { %v3215_v53 = vpop.f32.mrf.mxu1 }
 0x9dc   :  { %3435 = vtanh.f32 %v1125_v48  ;;  %v2803_v57 = vmul.f32 -1.442695, %v1125_v48  ;;  %v2805_v58 = vmul.f32 -1.442695, %v1226_v51 }
 0x9dd   :  { %3437 = vtanh.f32 %v1226_v51 }
 0x9de   :  { %3439 = vpow2.f32 %v2803_v57 }
 0x9df   :  { %3441 = vpow2.f32 %v2805_v58 }
 0x9e9   :  { %v3436_v54 = vpop.eup %3435 }
 0x9ea   :  { %v3438_v56 = vpop.eup %3437  ;;  %1135 = vrot.lane.b32.xlu0 %v3436_v54, %s3570_s13 }
 0x9eb   :  { %1236 = vrot.lane.b32.xlu1 %v3438_v56, %s3570_s13  ;;  %v3440_v59 = vpop.eup %3439 }
 0x9ec   :  { %v3442_v61 = vpop.eup %3441  ;;  %v1129_v0 = vadd.f32 1.0, %v3440_v59 }
 0x9ed   :  { %v1230_v1 = vadd.f32 1.0, %v3442_v61 }
 0x9ee   :  { %3443 = vrcp.f32 %v1129_v0 }
 0x9ef   :  { %3445 = vrcp.f32 %v1230_v1 }
 0x9fb   :  { %v3444_v14 = vpop.eup %3443 }
 0x9fc   :  { %v3446_v3 = vpop.eup %3445  ;;  %v1133_v7 = vmul.f32 %v3444_v14, %v3957_v21 }
 0x9fd   :  { %v1234_v8 = vmul.f32 %v3446_v3, %v3961_v26 }
 0xa5c   :  { %v1136_v2 = vpop.permute.xlu0 %1135 }
 0xa5d   :  { %v1237_v4 = vpop.permute.xlu1 %1236  ;;  %v1138_v5 = vmul.f32 %v3444_v14, %v1136_v2 }
 0xa5e   :  { %v1239_v6 = vmul.f32 %v3446_v3, %v1237_v4 }
 0xa5f   :  { %1140 = vrot.lane.b32.xlu0 %v1138_v5, %s3571_s14 }
 0xa60   :  { %1241 = vrot.lane.b32.xlu1 %v1239_v6, %s3571_s14 }
 0xad1   :  { %v1141_v9 = vpop.permute.xlu0 %1140 }
 0xad2   :  { %v1242_v10 = vpop.permute.xlu1 %1241  ;;  %v4010_v16 = vadd.f32 %v1141_v9, %v1133_v7 }
 0xad3   :  { %v4012_v12 = vadd.f32 %v1242_v10, %v1234_v8 }
 0xad4   :  { %3447 = vtanh.f32 %v4010_v16 }
 0xad5   :  { %3449 = vtanh.f32 %v4012_v12 }
 0xae1   :  { %v3448_v11 = vpop.eup %3447 }
 0xae2   :  { %v3450_v13 = vpop.eup %3449  ;;  %1146 = vrot.lane.b32.xlu0 %v3448_v11, %s3570_s13 }
 0xae3   :  { %1247 = vrot.lane.b32.xlu1 %v3450_v13, %s3570_s13 }
 0xb54   :  { %v1147_v15 = vpop.permute.xlu0 %1146 }
 0xb55   :  { %v1248_v17 = vpop.permute.xlu1 %1247  ;;  %v1149_v19 = vmul.f32 %v3444_v14, %v1147_v15 }
 0xb56   :  { %v1250_v21 = vmul.f32 %v3446_v3, %v1248_v17 }
 0xb57   :  { %1151 = vrot.lane.b32.xlu0 %v1149_v19, %s3571_s14 }
 0xb58   :  { %1324 = vrot.lane.b32.xlu1 %v1250_v21, %s3571_s14 }
 0xbc9   :  { %v1152_v23 = vpop.permute.xlu0 %1151 }
 0xbca   :  { %v1325_v24 = vpop.permute.xlu1 %1324  ;;  %1155 = vst.msk [vmem:[#allocation3 + $0x10] sm:$0xff] %vm27_vm0, %v1152_v23  ;;  %3225 = vmatmul.mubr.msk.f32.vlgmr.msra.gmra.mxu0 %vm27_vm0, %v1152_v23 }
 0xbcb   :  { %3236 = vmatmul.mubr.msk.f32.vlgmr.msra.gmra.mxu1 %vm27_vm0, %v1325_v24  ;;  %3239 = vmatpush3.msra.mxu0 %v3737_v52 }
 0xbcc   :  { %3240 = vmatprep.subr.mxu0 %v3568_v40  ;;  %3246 = vmatprep.mubr.msk.f32.mxu0 %vm3569_vm1, %v3568_v40 }
 0xbcd   :  { %3241 = vmatpush3.msra.mxu0 %v3742_v55  ;;  %3250 = vmatpush3.msra.mxu1 %v3802_v43 }
 0xbce   :  { %3242 = vmatprep.subr.mxu0 %v3568_v40  ;;  %3251 = vmatprep.subr.mxu1 %v3568_v40 }
 0xbcf   :  { %3243 = vmatpush3.msra.mxu0 %v3749_v60  ;;  %3252 = vmatpush3.msra.mxu1 %v3807_v44 }
 0xbd0   :  { %3244 = vmatprep.subr.mxu0 %v3568_v40  ;;  %3253 = vmatprep.subr.mxu1 %v3568_v40 }
 0xbd1   :  { %3245 = vmatpush3.msra.mxu0 %v3756_v63  ;;  %3254 = vmatpush3.msra.mxu1 %v3821_v46 }
 0xbd2   :  { %3247 = vmatmul.mubr.msk.f32.vlgmr.msra.gmra.mxu0 %vm27_vm0, %v1325_v24  ;;  %3255 = vmatprep.subr.mxu1 %v3568_v40 }
 0xbd3   :  { %3260 = vmatprep.subr.mxu0 %v3568_v40  ;;  %3256 = vmatpush3.msra.mxu1 %v3838_v49 }
 0xbd4   :  { %3261 = vmatpush3.msra.mxu0 %v3797_v42  ;;  %3257 = vmatprep.mubr.msk.f32.mxu1 %vm3569_vm1, %v3568_v40 }
 0xbd5   :  { %3262 = vmatprep.subr.mxu0 %v3568_v40  ;;  %3271 = vmatprep.subr.mxu1 %v3568_v40 }
 0xbd6   :  { %3263 = vmatpush3.msra.mxu0 %v3814_v45  ;;  %3268 = vmatprep.mubr.msk.f32.mxu0 %vm3569_vm1, %v3568_v40 }
 0xbd7   :  { %3264 = vmatprep.subr.mxu0 %v3568_v40 }
 0xbd8   :  { %3265 = vmatpush3.msra.mxu0 %v3826_v47 }
 0xbd9   :  { %3266 = vmatprep.subr.mxu0 %v3568_v40 }
 0xbda   :  { %3267 = vmatpush3.msra.mxu0 %v3844_v50 }
 0xbdb   :  { %3282 = vmatprep.subr.mxu0 %v3568_v40 }
 0xc8a   :  { %v1319_v26 = vpop.f32.mrf.mxu0 }
 0xc8b   :  { %v1394_v27 = vpop.f32.mrf.mxu1 }
 0xc8c   :  { %v1395_v28 = vadd.f32 %v1394_v27, %v1319_v26  ;;  %v3226_v29 = vpop.f32.mrf.mxu0 }
 0xc8d   :  { %v3237_v30 = vpop.f32.mrf.mxu1 }
 0xc8e   :  { %v1398_v31 = vadd.f32 %v3896_v62, %v1395_v28 }
 0xc90   :  { %3451 = vtanh.f32 %v1398_v31  ;;  %v2808_v37 = vmul.f32 -1.442695, %v1398_v31 }
 0xc92   :  { %v1495_v33 = vpop.f32.mrf.mxu0 }
 0xc93   :  { %v1499_v32 = vadd.f32 %v1495_v33, %v3782_v20 }
 0xc94   :  { %v3248_v34 = vpop.f32.mrf.mxu0 }
 0xc95   :  { %3453 = vtanh.f32 %v1499_v32  ;;  %v2810_v38 = vmul.f32 -1.442695, %v1499_v32 }
 0xc96   :  { %3455 = vpow2.f32 %v2808_v37 }
 0xc97   :  { %3457 = vpow2.f32 %v2810_v38 }
 0xc9d   :  { %v3452_v35 = vpop.eup %3451 }
 0xc9e   :  { %1408 = vrot.lane.b32.xlu0 %v3452_v35, %s3570_s13 }
 0xca2   :  { %v3454_v36 = vpop.eup %3453 }
 0xca3   :  { %1509 = vrot.lane.b32.xlu1 %v3454_v36, %s3570_s13  ;;  %v3456_v39 = vpop.eup %3455 }
 0xca4   :  { %v1402_v41 = vadd.f32 1.0, %v3456_v39  ;;  %v3458_v48 = vpop.eup %3457 }
 0xca5   :  { %v1503_v51 = vadd.f32 1.0, %v3458_v48 }
 0xca6   :  { %3459 = vrcp.f32 %v1402_v41 }
 0xca7   :  { %3461 = vrcp.f32 %v1503_v51 }
 0xcb3   :  { %v3460_v53 = vpop.eup %3459 }
 0xcb4   :  { %v3462_v56 = vpop.eup %3461  ;;  %v1406_v59 = vmul.f32 %v3460_v53, %v4010_v16 }
 0xcb5   :  { %v1507_v1 = vmul.f32 %v3462_v56, %v4012_v12 }
 0xd10   :  { %v1409_v20 = vpop.permute.xlu0 %1408 }
 0xd11   :  { %v1411_v54 = vmul.f32 %v3460_v53, %v1409_v20 }
 0xd13   :  { %1413 = vrot.lane.b32.xlu0 %v1411_v54, %s3571_s14 }
 0xd15   :  { %v1510_v57 = vpop.permute.xlu1 %1509 }
 0xd16   :  { %v1512_v58 = vmul.f32 %v3462_v56, %v1510_v57 }
 0xd18   :  { %1514 = vrot.lane.b32.xlu1 %v1512_v58, %s3571_s14  ;;  %v4130_v58 = vld [vmem:[%s4378_s2 + $0x118] sm:$0xff] }
 0xd85   :  { %v1414_v61 = vpop.permute.xlu0 %1413 }
 0xd86   :  { %v4061_v0 = vadd.f32 %v1414_v61, %v1406_v59  ;;  %v4139_v59 = vld [vmem:[%s4378_s2 + $0x110] sm:$0xff]  ;;  %v4148_v61 = vld [vmem:[%s4378_s2 + $0x108] sm:$0xff] }
 0xd88   :  { %3463 = vtanh.f32 %v4061_v0 }
 0xd8a   :  { %v1515_v14 = vpop.permute.xlu1 %1514 }
 0xd8b   :  { %v4065_v2 = vadd.f32 %v1515_v14, %v1507_v1 }
 0xd8d   :  { %3465 = vtanh.f32 %v4065_v2 }
 0xd95   :  { %v3464_v3 = vpop.eup %3463 }
 0xd96   :  { %1419 = vrot.lane.b32.xlu0 %v3464_v3, %s3570_s13 }
 0xd9a   :  { %v3466_v4 = vpop.eup %3465 }
 0xd9b   :  { %1520 = vrot.lane.b32.xlu1 %v3466_v4, %s3570_s13 }
 0xe08   :  { %v1420_v5 = vpop.permute.xlu0 %1419 }
 0xe09   :  { %v1422_v6 = vmul.f32 %v3460_v53, %v1420_v5 }
 0xe0b   :  { %1424 = vrot.lane.b32.xlu0 %v1422_v6, %s3571_s14 }
 0xe0d   :  { %v1521_v7 = vpop.permute.xlu1 %1520 }
 0xe0e   :  { %v1523_v8 = vmul.f32 %v3462_v56, %v1521_v7 }
 0xe10   :  { %1597 = vrot.lane.b32.xlu1 %v1523_v8, %s3571_s14 }
 0xe7d   :  { %v1425_v9 = vpop.permute.xlu0 %1424 }
 0xe7e   :  { %1428 = vst.msk [vmem:[#allocation3 + $0x18] sm:$0xff] %vm27_vm0, %v1425_v9  ;;  %3258 = vmatmul.mubr.msk.f32.vlgmr.msra.gmra.mxu1 %vm27_vm0, %v1425_v9 }
 0xe7f   :  { %3272 = vmatpush3.msra.mxu1 %v3737_v52  ;;  %3279 = vmatprep.mubr.msk.f32.mxu1 %vm3569_vm1, %v3568_v40 }
 0xe80   :  { %3273 = vmatprep.subr.mxu1 %v3568_v40 }
 0xe81   :  { %3274 = vmatpush3.msra.mxu1 %v3742_v55 }
 0xe82   :  { %3275 = vmatprep.subr.mxu1 %v3568_v40  ;;  %v1598_v10 = vpop.permute.xlu1 %1597 }
 0xe83   :  { %3276 = vmatpush3.msra.mxu1 %v3749_v60  ;;  %3269 = vmatmul.mubr.msk.f32.vlgmr.msra.gmra.mxu0 %vm27_vm0, %v1598_v10 }
 0xe84   :  { %3277 = vmatprep.subr.mxu1 %v3568_v40  ;;  %3283 = vmatpush3.msra.mxu0 %v3802_v43 }
 0xe85   :  { %3278 = vmatpush3.msra.mxu1 %v3756_v63  ;;  %3284 = vmatprep.subr.mxu0 %v3568_v40 }
 0xe86   :  { %3280 = vmatmul.mubr.msk.f32.vlgmr.msra.gmra.mxu1 %vm27_vm0, %v1598_v10  ;;  %3293 = vmatprep.subr.mxu1 %v3568_v40 }
 0xe87   :  { %3294 = vmatpush3.msra.mxu1 %v3797_v42  ;;  %3285 = vmatpush3.msra.mxu0 %v3807_v44 }
 0xe88   :  { %3295 = vmatprep.subr.mxu1 %v3568_v40  ;;  %3286 = vmatprep.subr.mxu0 %v3568_v40 }
 0xe89   :  { %3296 = vmatpush3.msra.mxu1 %v3814_v45  ;;  %3287 = vmatpush3.msra.mxu0 %v3821_v46 }
 0xe8a   :  { %3297 = vmatprep.subr.mxu1 %v3568_v40  ;;  %3288 = vmatprep.subr.mxu0 %v3568_v40 }
 0xe8b   :  { %3298 = vmatpush3.msra.mxu1 %v3826_v47  ;;  %3289 = vmatpush3.msra.mxu0 %v3838_v49 }
 0xe8c   :  { %3299 = vmatprep.subr.mxu1 %v3568_v40  ;;  %3301 = vmatprep.mubr.msk.f32.mxu1 %vm3569_vm1, %v3568_v40 }
 0xe8d   :  { %3300 = vmatpush3.msra.mxu1 %v3844_v50  ;;  %3290 = vmatprep.mubr.msk.f32.mxu0 %vm3569_vm1, %v3568_v40 }
 0xe8e   :  { %3304 = vmatprep.subr.mxu0 %v3568_v40  ;;  %3315 = vmatprep.subr.mxu1 %v3568_v40 }
 0xf3e   :  { %v1592_v52 = vpop.f32.mrf.mxu1 }
 0xf40   :  { %v3259_v55 = vpop.f32.mrf.mxu1 }
 0xf43   :  { %v1667_v60 = vpop.f32.mrf.mxu0 }
 0xf44   :  { %v1668_v63 = vadd.f32 %v1667_v60, %v1592_v52 }
 0xf45   :  { %v3270_v16 = vpop.f32.mrf.mxu0 }
 0xf46   :  { %v1671_v12 = vadd.f32 %v3896_v62, %v1668_v63  ;;  %v1768_v11 = vpop.f32.mrf.mxu1 }
 0xf47   :  { %v1772_v13 = vadd.f32 %v1768_v11, %v3780_v18 }
 0xf48   :  { %3467 = vtanh.f32 %v1671_v12  ;;  %v3281_v15 = vpop.f32.mrf.mxu1  ;;  %v2813_v21 = vmul.f32 -1.442695, %v1671_v12 }
 0xf49   :  { %3469 = vtanh.f32 %v1772_v13  ;;  %v2815_v23 = vmul.f32 -1.442695, %v1772_v13 }
 0xf4a   :  { %3471 = vpow2.f32 %v2813_v21 }
 0xf4b   :  { %3473 = vpow2.f32 %v2815_v23 }
 0xf55   :  { %v3468_v17 = vpop.eup %3467 }
 0xf56   :  { %v3470_v19 = vpop.eup %3469  ;;  %1681 = vrot.lane.b32.xlu0 %v3468_v17, %s3570_s13 }
 0xf57   :  { %1782 = vrot.lane.b32.xlu1 %v3470_v19, %s3570_s13  ;;  %v3472_v24 = vpop.eup %3471 }
 0xf58   :  { %v3474_v26 = vpop.eup %3473  ;;  %v1675_v27 = vadd.f32 1.0, %v3472_v24 }
 0xf59   :  { %v1776_v28 = vadd.f32 1.0, %v3474_v26 }
 0xf5a   :  { %3475 = vrcp.f32 %v1675_v27 }
 0xf5b   :  { %3477 = vrcp.f32 %v1776_v28 }
 0xf67   :  { %v3476_v18 = vpop.eup %3475 }
 0xf68   :  { %v3478_v30 = vpop.eup %3477  ;;  %v1679_v34 = vmul.f32 %v3476_v18, %v4061_v0 }
 0xf69   :  { %v1780_v35 = vmul.f32 %v3478_v30, %v4065_v2 }
 0xfc8   :  { %v1682_v29 = vpop.permute.xlu0 %1681 }
 0xfc9   :  { %v1783_v31 = vpop.permute.xlu1 %1782  ;;  %v1684_v33 = vmul.f32 %v3476_v18, %v1682_v29  ;;  %v3560_v29 = vld [vmem:[%s4378_s2 + $0x138] sm:$0xff] }
 0xfca   :  { %v1785_v32 = vmul.f32 %v3478_v30, %v1783_v31  ;;  %v3562_v31 = vld [vmem:[%s4378_s2 + $0x130] sm:$0xff] }
 0xfcb   :  { %1686 = vrot.lane.b32.xlu0 %v1684_v33, %s3571_s14  ;;  %v3563_v33 = vld [vmem:[%s4378_s2 + $0x148] sm:$0xff] }
 0xfcc   :  { %1787 = vrot.lane.b32.xlu1 %v1785_v32, %s3571_s14  ;;  %v3564_v32 = vld [vmem:[%s4378_s2 + $0x128] sm:$0xff] }
0x103d   :  { %v1687_v36 = vpop.permute.xlu0 %1686 }
0x103e   :  { %v1788_v37 = vpop.permute.xlu1 %1787  ;;  %v4114_v38 = vadd.f32 %v1687_v36, %v1679_v34  ;;  %v3565_v34 = vld [vmem:[%s4378_s2 + $0x140] sm:$0xff] }
0x103f   :  { %v4116_v39 = vadd.f32 %v1788_v37, %v1780_v35  ;;  %v3566_v35 = vld [vmem:[%s4378_s2 + $0x120] sm:$0xff] }
0x1040   :  { %3479 = vtanh.f32 %v4114_v38 }
0x1041   :  { %3481 = vtanh.f32 %v4116_v39 }
0x104d   :  { %v3480_v41 = vpop.eup %3479 }
0x104e   :  { %v3482_v48 = vpop.eup %3481  ;;  %1692 = vrot.lane.b32.xlu0 %v3480_v41, %s3570_s13 }
0x104f   :  { %1793 = vrot.lane.b32.xlu1 %v3482_v48, %s3570_s13 }
0x10c0   :  { %v1693_v51 = vpop.permute.xlu0 %1692 }
0x10c1   :  { %v1794_v53 = vpop.permute.xlu1 %1793  ;;  %v1695_v20 = vmul.f32 %v3476_v18, %v1693_v51  ;;  %v3559_v18 = vld [vmem:[%s4378_s2 + $0x158] sm:$0xff] }
0x10c2   :  { %v1796_v54 = vmul.f32 %v3478_v30, %v1794_v53  ;;  %v3561_v30 = vld [vmem:[%s4378_s2 + $0x150] sm:$0xff] }
0x10c3   :  { %1697 = vrot.lane.b32.xlu0 %v1695_v20, %s3571_s14 }
0x10c4   :  { %1870 = vrot.lane.b32.xlu1 %v1796_v54, %s3571_s14 }
0x1135   :  { %v1698_v56 = vpop.permute.xlu0 %1697 }
0x1136   :  { %v1871_v57 = vpop.permute.xlu1 %1870  ;;  %1701 = vst.msk [vmem:[#allocation3 + $0x20] sm:$0xff] %vm27_vm0, %v1698_v56  ;;  %3291 = vmatmul.mubr.msk.f32.vlgmr.msra.gmra.mxu0 %vm27_vm0, %v1698_v56 }
0x1137   :  { %3302 = vmatmul.mubr.msk.f32.vlgmr.msra.gmra.mxu1 %vm27_vm0, %v1871_v57  ;;  %3305 = vmatpush3.msra.mxu0 %v4130_v58 }
0x1138   :  { %3306 = vmatprep.subr.mxu0 %v3568_v40  ;;  %3312 = vmatprep.mubr.msk.f32.mxu0 %vm3569_vm1, %v3568_v40 }
0x1139   :  { %3307 = vmatpush3.msra.mxu0 %v4139_v59  ;;  %3316 = vmatpush3.msra.mxu1 %v3802_v43  ;;  %v4157_v43 = vld [vmem:[%s4378_s2 + $0x100] sm:$0xff] }
0x113a   :  { %3308 = vmatprep.subr.mxu0 %v3568_v40  ;;  %3317 = vmatprep.subr.mxu1 %v3568_v40 }
0x113b   :  { %3309 = vmatpush3.msra.mxu0 %v4148_v61  ;;  %3318 = vmatpush3.msra.mxu1 %v3807_v44 }
0x113c   :  { %3310 = vmatprep.subr.mxu0 %v3568_v40  ;;  %3319 = vmatprep.subr.mxu1 %v3568_v40 }
0x113d   :  { %3311 = vmatpush3.msra.mxu0 %v4157_v43  ;;  %3320 = vmatpush3.msra.mxu1 %v3821_v46 }
0x113e   :  { %3313 = vmatmul.mubr.msk.f32.vlgmr.msra.gmra.mxu0 %vm27_vm0, %v1871_v57  ;;  %3321 = vmatprep.subr.mxu1 %v3568_v40 }
0x113f   :  { %3326 = vmatprep.subr.mxu0 %v3568_v40  ;;  %3322 = vmatpush3.msra.mxu1 %v3838_v49 }
0x1140   :  { %3327 = vmatpush3.msra.mxu0 %v3797_v42  ;;  %3323 = vmatprep.mubr.msk.f32.mxu1 %vm3569_vm1, %v3568_v40 }
0x1141   :  { %3328 = vmatprep.subr.mxu0 %v3568_v40  ;;  %3337 = vmatprep.subr.mxu1 %v3568_v40 }
0x1142   :  { %3329 = vmatpush3.msra.mxu0 %v3814_v45  ;;  %3334 = vmatprep.mubr.msk.f32.mxu0 %vm3569_vm1, %v3568_v40 }
0x1143   :  { %3330 = vmatprep.subr.mxu0 %v3568_v40 }
0x1144   :  { %3331 = vmatpush3.msra.mxu0 %v3826_v47 }
0x1145   :  { %3332 = vmatprep.subr.mxu0 %v3568_v40 }
0x1146   :  { %3333 = vmatpush3.msra.mxu0 %v3844_v50 }
0x1147   :  { %3348 = vmatprep.subr.mxu0 %v3568_v40 }
0x11f6   :  { %v1865_v42 = vpop.f32.mrf.mxu0 }
0x11f7   :  { %v1940_v44 = vpop.f32.mrf.mxu1 }
0x11f8   :  { %v1941_v46 = vadd.f32 %v1940_v44, %v1865_v42  ;;  %v3292_v49 = vpop.f32.mrf.mxu0 }
0x11f9   :  { %v3303_v0 = vpop.f32.mrf.mxu1 }
0x11fa   :  { %v1944_v45 = vadd.f32 %v3896_v62, %v1941_v46 }
0x11fc   :  { %3483 = vtanh.f32 %v1944_v45  ;;  %v2818_v50 = vmul.f32 -1.442695, %v1944_v45 }
0x11fe   :  { %v2041_v1 = vpop.f32.mrf.mxu0 }
0x11ff   :  { %v2045_v14 = vadd.f32 %v2041_v1, %v3786_v25 }
0x1200   :  { %v3314_v2 = vpop.f32.mrf.mxu0 }
0x1201   :  { %3485 = vtanh.f32 %v2045_v14  ;;  %v2820_v4 = vmul.f32 -1.442695, %v2045_v14 }
0x1202   :  { %3487 = vpow2.f32 %v2818_v50 }
0x1203   :  { %3489 = vpow2.f32 %v2820_v4  ;;  %v2545_v4 = vld [vmem:[%s4378_s2 + $0x178] sm:$0xff] }
0x1209   :  { %v3484_v47 = vpop.eup %3483 }
0x120a   :  { %1954 = vrot.lane.b32.xlu0 %v3484_v47, %s3570_s13 }
0x120e   :  { %v3486_v3 = vpop.eup %3485 }
0x120f   :  { %2055 = vrot.lane.b32.xlu1 %v3486_v3, %s3570_s13  ;;  %v3488_v5 = vpop.eup %3487 }
0x1210   :  { %v1948_v6 = vadd.f32 1.0, %v3488_v5  ;;  %v3490_v7 = vpop.eup %3489 }
0x1211   :  { %v2049_v8 = vadd.f32 1.0, %v3490_v7 }
0x1212   :  { %3491 = vrcp.f32 %v1948_v6 }
0x1213   :  { %3493 = vrcp.f32 %v2049_v8 }
0x121f   :  { %v3492_v9 = vpop.eup %3491 }
0x1220   :  { %v3494_v52 = vpop.eup %3493  ;;  %v1952_v63 = vmul.f32 %v3492_v9, %v4114_v38 }
0x1221   :  { %v2053_v11 = vmul.f32 %v3494_v52, %v4116_v39 }
0x127c   :  { %v1955_v25 = vpop.permute.xlu0 %1954 }
0x127d   :  { %v1957_v10 = vmul.f32 %v3492_v9, %v1955_v25  ;;  %v2544_v25 = vld [vmem:[%s4378_s2 + $0x170] sm:$0xff] }
0x127f   :  { %1959 = vrot.lane.b32.xlu0 %v1957_v10, %s3571_s14 }
0x1281   :  { %v2056_v55 = vpop.permute.xlu1 %2055 }
0x1282   :  { %v2058_v60 = vmul.f32 %v3494_v52, %v2056_v55  ;;  %v2543_v55 = vld [vmem:[%s4378_s2 + $0x168] sm:$0xff] }
0x1284   :  { %2060 = vrot.lane.b32.xlu1 %v2058_v60, %s3571_s14  ;;  %v2542_v60 = vld [vmem:[%s4378_s2 + $0x160] sm:$0xff] }
0x12f1   :  { %v1960_v16 = vpop.permute.xlu0 %1959 }
0x12f2   :  { %v4185_v12 = vadd.f32 %v1960_v16, %v1952_v63  ;;  %v2535_v63 = vld [vmem:[#allocation3 + $0x8] sm:$0xff] }
0x12f4   :  { %3495 = vtanh.f32 %v4185_v12 }
0x12f6   :  { %v2061_v13 = vpop.permute.xlu1 %2060 }
0x12f7   :  { %v4189_v15 = vadd.f32 %v2061_v13, %v2053_v11  ;;  %v2537_v11 = vld [vmem:[#allocation3 + $0x18] sm:$0xff]  ;;  %v2538_v13 = vld [vmem:[#allocation3 + $0x20] sm:$0xff] }
0x12f9   :  { %3497 = vtanh.f32 %v4189_v15 }
0x1301   :  { %v3496_v17 = vpop.eup %3495 }
0x1302   :  { %1965 = vrot.lane.b32.xlu0 %v3496_v17, %s3570_s13 }
0x1306   :  { %v3498_v19 = vpop.eup %3497 }
0x1307   :  { %2066 = vrot.lane.b32.xlu1 %v3498_v19, %s3570_s13 }
0x1374   :  { %v1966_v21 = vpop.permute.xlu0 %1965 }
0x1375   :  { %v1968_v23 = vmul.f32 %v3492_v9, %v1966_v21 }
0x1377   :  { %1970 = vrot.lane.b32.xlu0 %v1968_v23, %s3571_s14 }
0x1379   :  { %v2067_v24 = vpop.permute.xlu1 %2066 }
0x137a   :  { %v2069_v26 = vmul.f32 %v3494_v52, %v2067_v24  ;;  %v2534_v52 = vld [vmem:[#allocation3] sm:$0xff] }
0x137c   :  { %2143 = vrot.lane.b32.xlu1 %v2069_v26, %s3571_s14 }
0x13e9   :  { %v1971_v27 = vpop.permute.xlu0 %1970 }
0x13ea   :  { %1974 = vst.msk [vmem:[#allocation3 + $0x28] sm:$0xff] %vm27_vm0, %v1971_v27  ;;  %3324 = vmatmul.mubr.msk.f32.vlgmr.msra.gmra.mxu1 %vm27_vm0, %v1971_v27  ;;  %v3567_v27 = vld [vmem:[%s4381_s3 + $0x2] ss:$0 sm:$0xff] }
0x13eb   :  { %3338 = vmatpush3.msra.mxu1 %v4130_v58  ;;  %3345 = vmatprep.mubr.msk.f32.mxu1 %vm3569_vm1, %v3568_v40 }
0x13ec   :  { %3339 = vmatprep.subr.mxu1 %v3568_v40 }
0x13ed   :  { %3340 = vmatpush3.msra.mxu1 %v4139_v59 }
0x13ee   :  { %3341 = vmatprep.subr.mxu1 %v3568_v40  ;;  %v2144_v28 = vpop.permute.xlu1 %2143 }
0x13ef   :  { %3342 = vmatpush3.msra.mxu1 %v4148_v61  ;;  %3335 = vmatmul.mubr.msk.f32.vlgmr.msra.gmra.mxu0 %vm27_vm0, %v2144_v28 }
0x13f0   :  { %3343 = vmatprep.subr.mxu1 %v3568_v40  ;;  %3349 = vmatpush3.msra.mxu0 %v3559_v18 }
0x13f1   :  { %3344 = vmatpush3.msra.mxu1 %v4157_v43  ;;  %3350 = vmatprep.subr.mxu0 %v3568_v40 }
0x13f2   :  { %3346 = vmatmul.mubr.msk.f32.vlgmr.msra.gmra.mxu1 %vm27_vm0, %v2144_v28  ;;  %3359 = vmatprep.subr.mxu1 %v3568_v40 }
0x13f3   :  { %3360 = vmatpush3.msra.mxu1 %v3560_v29  ;;  %3351 = vmatpush3.msra.mxu0 %v3561_v30 }
0x13f4   :  { %3361 = vmatprep.subr.mxu1 %v3568_v40  ;;  %3352 = vmatprep.subr.mxu0 %v3568_v40 }
0x13f5   :  { %3362 = vmatpush3.msra.mxu1 %v3562_v31  ;;  %3353 = vmatpush3.msra.mxu0 %v3563_v33 }
0x13f6   :  { %3363 = vmatprep.subr.mxu1 %v3568_v40  ;;  %3354 = vmatprep.subr.mxu0 %v3568_v40 }
0x13f7   :  { %3364 = vmatpush3.msra.mxu1 %v3564_v32  ;;  %3355 = vmatpush3.msra.mxu0 %v3565_v34 }
0x13f8   :  { %3365 = vmatprep.subr.mxu1 %v3568_v40  ;;  %3367 = vmatprep.mubr.msk.f32.mxu1 %vm3569_vm1, %v3568_v40 }
0x13f9   :  { %3366 = vmatpush3.msra.mxu1 %v3566_v35  ;;  %3356 = vmatprep.mubr.msk.f32.mxu0 %vm3569_vm1, %v3568_v40 }
0x13fa   :  { %3370 = vmatprep.subr.mxu0 %v2545_v4 }
0x14aa   :  { %v2138_v36 = vpop.f32.mrf.mxu1 }
0x14ac   :  { %v3325_v37 = vpop.f32.mrf.mxu1 }
0x14af   :  { %v2213_v38 = vpop.f32.mrf.mxu0 }
0x14b0   :  { %v2214_v39 = vadd.f32 %v2213_v38, %v2138_v36 }
0x14b1   :  { %v3336_v41 = vpop.f32.mrf.mxu0 }
0x14b2   :  { %v2217_v48 = vadd.f32 %v3896_v62, %v2214_v39  ;;  %v2314_v51 = vpop.f32.mrf.mxu1 }
0x14b3   :  { %v2318_v53 = vadd.f32 %v2314_v51, %v3784_v22  ;;  %v2829_v51 = vld [vmem:[%s4381_s3 + $0x3] ss:$0 sm:$0xff] }
0x14b4   :  { %3499 = vtanh.f32 %v2217_v48  ;;  %v3347_v20 = vpop.f32.mrf.mxu1  ;;  %v2823_v40 = vmul.f32 -1.442695, %v2217_v48 }
0x14b5   :  { %3501 = vtanh.f32 %v2318_v53  ;;  %v2825_v57 = vmul.f32 -1.442695, %v2318_v53 }
0x14b6   :  { %3503 = vpow2.f32 %v2823_v40 }
0x14b7   :  { %3505 = vpow2.f32 %v2825_v57 }
0x14c1   :  { %v3500_v54 = vpop.eup %3499 }
0x14c2   :  { %v3502_v56 = vpop.eup %3501  ;;  %2227 = vrot.lane.b32.xlu0 %v3500_v54, %s3570_s13 }
0x14c3   :  { %2328 = vrot.lane.b32.xlu1 %v3502_v56, %s3570_s13  ;;  %v3504_v58 = vpop.eup %3503 }
0x14c4   :  { %v3506_v59 = vpop.eup %3505  ;;  %v2221_v61 = vadd.f32 1.0, %v3504_v58 }
0x14c5   :  { %v2322_v62 = vadd.f32 1.0, %v3506_v59 }
0x14c6   :  { %3507 = vrcp.f32 %v2221_v61 }
0x14c7   :  { %3509 = vrcp.f32 %v2322_v62 }
0x14d3   :  { %v3508_v22 = vpop.eup %3507 }
0x14d4   :  { %v3510_v42 = vpop.eup %3509  ;;  %v2225_v0 = vmul.f32 %v3508_v22, %v4185_v12  ;;  %v2536_v12 = vld [vmem:[#allocation3 + $0x10] sm:$0xff] }
0x14d5   :  { %v2326_v45 = vmul.f32 %v3510_v42, %v4189_v15  ;;  %v2539_v15 = vld [vmem:[#allocation3 + $0x28] sm:$0xff] }
0x1534   :  { %v2228_v43 = vpop.permute.xlu0 %2227 }
0x1535   :  { %v2329_v44 = vpop.permute.xlu1 %2328  ;;  %v2230_v46 = vmul.f32 %v3508_v22, %v2228_v43 }
0x1536   :  { %v2331_v49 = vmul.f32 %v3510_v42, %v2329_v44 }
0x1537   :  { %2232 = vrot.lane.b32.xlu0 %v2230_v46, %s3571_s14 }
0x1538   :  { %2333 = vrot.lane.b32.xlu1 %v2331_v49, %s3571_s14 }
0x15a9   :  { %v2233_v1 = vpop.permute.xlu0 %2232 }
0x15aa   :  { %v2334_v14 = vpop.permute.xlu1 %2333  ;;  %v4252_v2 = vadd.f32 %v2233_v1, %v2225_v0 }
0x15ab   :  { %v4254_v47 = vadd.f32 %v2334_v14, %v2326_v45 }
0x15ac   :  { %3511 = vtanh.f32 %v4252_v2 }
0x15ad   :  { %3513 = vtanh.f32 %v4254_v47 }
0x15b9   :  { %v3512_v3 = vpop.eup %3511 }
0x15ba   :  { %v3514_v50 = vpop.eup %3513  ;;  %2238 = vrot.lane.b32.xlu0 %v3512_v3, %s3570_s13 }
0x15bb   :  { %2339 = vrot.lane.b32.xlu1 %v3514_v50, %s3570_s13 }
0x162c   :  { %v2239_v5 = vpop.permute.xlu0 %2238 }
0x162d   :  { %v2340_v6 = vpop.permute.xlu1 %2339  ;;  %v2241_v7 = vmul.f32 %v3508_v22, %v2239_v5 }
0x162e   :  { %v2342_v8 = vmul.f32 %v3510_v42, %v2340_v6 }
0x162f   :  { %2243 = vrot.lane.b32.xlu0 %v2241_v7, %s3571_s14 }
0x1630   :  { %2416 = vrot.lane.b32.xlu1 %v2342_v8, %s3571_s14 }
0x16a1   :  { %v2244_v9 = vpop.permute.xlu0 %2243 }
0x16a2   :  { %v2417_v10 = vpop.permute.xlu1 %2416  ;;  %2247 = vst.msk [vmem:[#allocation3 + $0x30] sm:$0xff] %vm27_vm0, %v2244_v9  ;;  %3357 = vmatmul.mubr.msk.f32.vlgmr.msra.gmra.mxu0 %vm27_vm0, %v2244_v9 }
0x16a3   :  { %2522 = vst.msk [vmem:[#allocation2] sm:$0xff] %vm27_vm0, %v2417_v10  ;;  %3368 = vmatmul.mubr.msk.f32.vlgmr.msra.gmra.mxu1 %vm27_vm0, %v2417_v10  ;;  %3371 = vmatpush3.msra.mxu0 %v2545_v4 }
0x16a4   :  { %3372 = vmatprep.subr.mxu0 %v2544_v25  ;;  %3378 = vmatprep.mubr.msk.f32.mxu0 %vm27_vm0, %v2534_v52 }
0x16a5   :  { %3373 = vmatpush3.msra.mxu0 %v2544_v25 }
0x16a6   :  { %3374 = vmatprep.subr.mxu0 %v2543_v55 }
0x16a7   :  { %3375 = vmatpush3.msra.mxu0 %v2543_v55 }
0x16a8   :  { %3376 = vmatprep.subr.mxu0 %v2542_v60 }
0x16a9   :  { %3377 = vmatpush3.msra.mxu0 %v2542_v60  ;;  %v2540_v17 = vld [vmem:[#allocation3 + $0x30] sm:$0xff] }
0x16aa   :  { %v2770_v16 = vld [vmem:[#allocation2] sm:$0xff]  ;;  %3379 = vmatmul.mubr.msk.f32.vlgmr.msra.gmra.mxu0 %vm27_vm0, %v2535_v63 }
0x16ab   :  { %2774 = vst.msk [vmem:[%s4382_s5] sm:$0xff] %vm27_vm0, %v2770_v16  ;;  %3381 = vmatprep.mubr.msk.f32.mxu0 %vm27_vm0, %v2536_v12 }
0x16ae   :  { %3382 = vmatmul.mubr.msk.f32.gmra.mxu0 %vm27_vm0, %v2537_v11 }
0x16af   :  { %3384 = vmatprep.mubr.msk.f32.mxu0 %vm27_vm0, %v2538_v13 }
0x16b2   :  { %3385 = vmatmul.mubr.msk.f32.gmra.mxu0 %vm27_vm0, %v2539_v15 }
0x16b3   :  { %3387 = vmatprep.mubr.msk.f32.mxu0 %vm27_vm0, %v2540_v17 }
0x1762   :  { %v2411_v19 = vpop.f32.mrf.mxu0 }
0x1763   :  { %v2486_v21 = vpop.f32.mrf.mxu1 }
0x1764   :  { %v2487_v23 = vadd.f32 %v2486_v21, %v2411_v19  ;;  %v3358_v24 = vpop.f32.mrf.mxu0 }
0x1765   :  { %v3369_v26 = vpop.f32.mrf.mxu1 }
0x1766   :  { %v2490_v28 = vadd.f32 %v3567_v27, %v2487_v23 }
0x1768   :  { %3515 = vtanh.f32 %v2490_v28  ;;  %v2828_v29 = vmul.f32 -1.442695, %v2490_v28 }
0x176a   :  { %3517 = vpow2.f32 %v2828_v29  ;;  %v3380_v39 = vpop.f32.mrf.mxu0 }
0x176b   :  { %v2646_v61 = vadd.f32 %v3380_v39, %v2829_v51 }
0x176c   :  { %v2640_v41 = vpop.f32.mrf.mxu0 }
0x176d   :  { %v2641_v53 = vadd.f32 %v2829_v51, %v2640_v41 }
0x176e   :  { %v3383_v48 = vpop.f32.mrf.mxu0 }
0x176f   :  { %v2656_v56 = vadd.f32 %v3383_v48, %v2829_v51 }
0x1770   :  { %v2650_v20 = vpop.f32.mrf.mxu0 }
0x1771   :  { %v2651_v54 = vadd.f32 %v2829_v51, %v2650_v20 }
0x1772   :  { %v3386_v40 = vpop.f32.mrf.mxu0 }
0x1773   :  { %v2666_v57 = vadd.f32 %v3386_v40, %v2829_v51 }
0x1774   :  { %v2660_v62 = vpop.f32.mrf.mxu0 }
0x1775   :  { %v3516_v18 = vpop.eup %3515  ;;  %v2661_v22 = vadd.f32 %v2829_v51, %v2660_v62 }
0x1776   :  { %2500 = vrot.lane.b32.xlu0 %v3516_v18, %s3570_s13 }
0x1777   :  { %v3518_v30 = vpop.eup %3517 }
0x1778   :  { %v2494_v31 = vadd.f32 1.0, %v3518_v30 }
0x177a   :  { %3519 = vrcp.f32 %v2494_v31 }
0x1787   :  { %v3520_v33 = vpop.eup %3519 }
0x1788   :  { %v2498_v35 = vmul.f32 %v3520_v33, %v4252_v2 }
0x17e8   :  { %v2501_v32 = vpop.permute.xlu0 %2500 }
0x17e9   :  { %v2503_v34 = vmul.f32 %v3520_v33, %v2501_v32 }
0x17eb   :  { %2505 = vrot.lane.b32.xlu1 %v2503_v34, %s3571_s14 }
0x185d   :  { %v2506_v36 = vpop.permute.xlu1 %2505 }
0x185e   :  { %v4295_v37 = vadd.f32 %v2506_v36, %v2498_v35 }
0x1860   :  { %3521 = vtanh.f32 %v4295_v37 }
0x186d   :  { %v3522_v38 = vpop.eup %3521 }
0x186e   :  { %2511 = vrot.lane.b32.xlu0 %v3522_v38, %s3570_s13 }
0x188d   :  { %2679 = vmax.xlane.f32.xlu0 %v2641_v53 }
0x1891   :  { %2683 = vmax.xlane.f32.xlu0 %v2651_v54 }
0x1895   :  { %2685 = vmax.xlane.f32.xlu0 %v2656_v56 }
0x1899   :  { %2689 = vmax.xlane.f32.xlu0 %v2666_v57 }
0x18e0   :  { %v2512_v58 = vpop.permute.xlu0 %2511 }
0x18e1   :  { %v2514_v59 = vmul.f32 %v3520_v33, %v2512_v58 }
0x18e3   :  { %2516 = vrot.lane.b32.xlu1 %v2514_v59, %s3571_s14 }
0x1907   :  { %2681 = vmax.xlane.f32.xlu1 %v2646_v61 }
0x190b   :  { %2687 = vmax.xlane.f32.xlu1 %v2661_v22 }
0x1916   :  { %v2680_v46 = vpop.xlane.xlu0 %2679 }
0x1917   :  { %v4312_v14 = vsub.f32 %v2641_v53, %v2680_v46 }
0x1919   :  { %v2703_v4 = vmul.f32 1.442695, %v4312_v14 }
0x191a   :  { %v2684_v49 = vpop.xlane.xlu0 %2683 }
0x191b   :  { %v4318_v5 = vsub.f32 %v2651_v54, %v2684_v49 }
0x191d   :  { %v2707_v9 = vmul.f32 1.442695, %v4318_v5 }
0x191e   :  { %v2686_v45 = vpop.xlane.xlu0 %2685 }
0x191f   :  { %v4314_v2 = vsub.f32 %v2656_v56, %v2686_v45 }
0x1921   :  { %v2709_v7 = vmul.f32 1.442695, %v4314_v2 }
0x1922   :  { %v2690_v50 = vpop.xlane.xlu0 %2689 }
0x1923   :  { %v4321_v8 = vsub.f32 %v2666_v57, %v2690_v50 }
0x1925   :  { %v2713_v10 = vmul.f32 1.442695, %v4321_v8 }
0x1955   :  { %v2517_v43 = vpop.permute.xlu1 %2516 }
0x1956   :  { %2520 = vst.msk [vmem:[#allocation3 + $0x38] sm:$0xff] %vm27_vm0, %v2517_v43  ;;  %2528 = vst.msk [vmem:[#allocation2 + $0x10] sm:$0xff] %vm27_vm0, %v2517_v43 }
0x195d   :  { %v2772_v42 = vld [vmem:[#allocation2 + $0x10] sm:$0xff]  ;;  %v2541_v44 = vld [vmem:[#allocation3 + $0x38] sm:$0xff] }
0x195e   :  { %2776 = vst.msk [vmem:[%s4382_s5 + $0x10] sm:$0xff] %vm27_vm0, %v2772_v42  ;;  %3388 = vmatmul.mubr.msk.f32.gmra.mxu0 %vm27_vm0, %v2541_v44 }
0x1990   :  { %v2682_v0 = vpop.xlane.xlu1 %2681 }
0x1991   :  { %v4310_v1 = vsub.f32 %v2646_v61, %v2682_v0 }
0x1993   :  { %v2705_v3 = vmul.f32 1.442695, %v4310_v1 }
0x1994   :  { %v2688_v6 = vpop.xlane.xlu1 %2687 }
0x1995   :  { %3523 = vpow2.f32 %v2705_v3  ;;  %v4324_v25 = vsub.f32 %v2661_v22, %v2688_v6 }
0x1996   :  { %3525 = vpow2.f32 %v2703_v4 }
0x1997   :  { %3527 = vpow2.f32 %v2709_v7  ;;  %v2711_v52 = vmul.f32 1.442695, %v4324_v25 }
0x1998   :  { %3529 = vpow2.f32 %v2707_v9 }
0x1999   :  { %3531 = vpow2.f32 %v2713_v10 }
0x199a   :  { %3533 = vpow2.f32 %v2711_v52 }
0x19a2   :  { %v3524_v12 = vpop.eup %3523 }
0x19a3   :  { %v3526_v11 = vpop.eup %3525 }
0x19a4   :  { %v3528_v13 = vpop.eup %3527 }
0x19a5   :  { %v3530_v15 = vpop.eup %3529 }
0x19a6   :  { %v3532_v17 = vpop.eup %3531 }
0x19a7   :  { %v3534_v19 = vpop.eup %3533 }
0x1a1e   :  { %v3389_v55 = vpop.f32.mrf.mxu0 }
0x1a1f   :  { %v2676_v60 = vadd.f32 %v3389_v55, %v2829_v51 }
0x1a20   :  { %v2670_v63 = vpop.f32.mrf.mxu0 }
0x1a21   :  { %v2671_v16 = vadd.f32 %v2829_v51, %v2670_v63  ;;  %2693 = vmax.xlane.f32.xlu0 %v2676_v60 }
0x1a23   :  { %2691 = vmax.xlane.f32.xlu1 %v2671_v16 }
0x1a25   :  { %2721 = vadd.xlane.f32.xlu0 %v3524_v12 }
0x1a27   :  { %2719 = vadd.xlane.f32.xlu1 %v3526_v11 }
0x1a29   :  { %2725 = vadd.xlane.f32.xlu0 %v3528_v13 }
0x1a2b   :  { %2723 = vadd.xlane.f32.xlu1 %v3530_v15 }
0x1a2d   :  { %2729 = vadd.xlane.f32.xlu0 %v3532_v17 }
0x1a2f   :  { %2727 = vadd.xlane.f32.xlu1 %v3534_v19 }
0x1aaa   :  { %v2694_v21 = vpop.xlane.xlu0 %2693 }
0x1aab   :  { %v4328_v23 = vsub.f32 %v2676_v60, %v2694_v21 }
0x1aac   :  { %v2692_v24 = vpop.xlane.xlu1 %2691 }
0x1aad   :  { %v2717_v26 = vmul.f32 1.442695, %v4328_v23  ;;  %v4331_v27 = vsub.f32 %v2671_v16, %v2692_v24 }
0x1aae   :  { %v2722_v28 = vpop.xlane.xlu0 %2721 }
0x1aaf   :  { %3535 = vpow2.f32 %v2717_v26  ;;  %v2715_v18 = vmul.f32 1.442695, %v4331_v27 }
0x1ab0   :  { %3537 = vlog2.f32 %v2722_v28  ;;  %v2720_v29 = vpop.xlane.xlu1 %2719 }
0x1ab1   :  { %3539 = vpow2.f32 %v2715_v18 }
0x1ab2   :  { %3541 = vlog2.f32 %v2720_v29  ;;  %v2726_v30 = vpop.xlane.xlu0 %2725 }
0x1ab3   :  { %3543 = vlog2.f32 %v2726_v30 }
0x1ab4   :  { %v2724_v31 = vpop.xlane.xlu1 %2723 }
0x1ab5   :  { %3545 = vlog2.f32 %v2724_v31 }
0x1ab6   :  { %v2730_v33 = vpop.xlane.xlu0 %2729 }
0x1ab7   :  { %3547 = vlog2.f32 %v2730_v33 }
0x1ab8   :  { %v2728_v32 = vpop.xlane.xlu1 %2727 }
0x1ab9   :  { %3549 = vlog2.f32 %v2728_v32 }
0x1abc   :  { %v3536_v34 = vpop.eup %3535 }
0x1abd   :  { %v3538_v35 = vpop.eup %3537  ;;  %2733 = vadd.xlane.f32.xlu0 %v3536_v34 }
0x1abe   :  { %v3540_v36 = vpop.eup %3539  ;;  %v2738_v38 = vmul.f32 0.6931472, %v3538_v35 }
0x1abf   :  { %v3542_v39 = vpop.eup %3541  ;;  %2731 = vadd.xlane.f32.xlu1 %v3540_v36 }
0x1ac0   :  { %v3544_v41 = vpop.eup %3543  ;;  %v2752_v48 = vsub.f32 %v4310_v1, %v2738_v38  ;;  %v2736_v51 = vmul.f32 0.6931472, %v3542_v39 }
0x1ac1   :  { %v2742_v53 = vmul.f32 0.6931472, %v3544_v41 }
0x1ac2   :  { %v3546_v20 = vpop.eup %3545  ;;  %2760 = vst [vmem:[%s4383_s4 + $0x8] sm:$0xff] %v2752_v48  ;;  %v2751_v54 = vsub.f32 %v4312_v14, %v2736_v51 }
0x1ac3   :  { %v2754_v56 = vsub.f32 %v4314_v2, %v2742_v53  ;;  %v2740_v40 = vmul.f32 0.6931472, %v3546_v20 }
0x1ac4   :  { %v3548_v57 = vpop.eup %3547  ;;  %2759 = vst [vmem:[%s4383_s4] sm:$0xff] %v2751_v54 }
0x1ac5   :  { %2762 = vst [vmem:[%s4383_s4 + $0x18] sm:$0xff] %v2754_v56  ;;  %v2753_v58 = vsub.f32 %v4318_v5, %v2740_v40  ;;  %v2746_v59 = vmul.f32 0.6931472, %v3548_v57 }
0x1ac6   :  { %v3550_v61 = vpop.eup %3549 }
0x1ac7   :  { %2761 = vst [vmem:[%s4383_s4 + $0x10] sm:$0xff] %v2753_v58  ;;  %v2756_v62 = vsub.f32 %v4321_v8, %v2746_v59  ;;  %v2744_v22 = vmul.f32 0.6931472, %v3550_v61 }
0x1ac9   :  { %2764 = vst [vmem:[%s4383_s4 + $0x28] sm:$0xff] %v2756_v62  ;;  %v2755_v43 = vsub.f32 %v4324_v25, %v2744_v22 }
0x1acb   :  { %2763 = vst [vmem:[%s4383_s4 + $0x20] sm:$0xff] %v2755_v43 }
0x1ad0   :  { %2524 = vrot.lane.b32.xlu1 %v4254_v47, %s3572_s9 }
0x1ad3   :  { %2530 = vrot.lane.b32.xlu0 %v4295_v37, %s3572_s9 }
0x1b46   :  { %v2734_v42 = vpop.xlane.xlu0 %2733 }
0x1b47   :  { %3551 = vlog2.f32 %v2734_v42 }
0x1b48   :  { %v2732_v44 = vpop.xlane.xlu1 %2731 }
0x1b49   :  { %3553 = vlog2.f32 %v2732_v44 }
0x1b4a   :  { %v2531_v46 = vpop.permute.xlu0 %2530 }
0x1b4b   :  { %2533 = vst.msk [vmem:[#allocation2 + $0x18] sm:$0xff] %vm27_vm0, %v2531_v46 }
0x1b4c   :  { %v2525_v49 = vpop.permute.xlu1 %2524 }
0x1b4d   :  { %2527 = vst.msk [vmem:[#allocation2 + $0x8] sm:$0xff] %vm27_vm0, %v2525_v49 }
0x1b52   :  { %v2773_v0 = vld [vmem:[#allocation2 + $0x18] sm:$0xff] }
0x1b53   :  { %2777 = vst.msk [vmem:[%s4382_s5 + $0x18] sm:$0xff] %vm27_vm0, %v2773_v0 }
0x1b54   :  { %v3552_v45 = vpop.eup %3551  ;;  %v2771_v47 = vld [vmem:[#allocation2 + $0x8] sm:$0xff] }
0x1b55   :  { %v2750_v1 = vmul.f32 0.6931472, %v3552_v45  ;;  %2775 = vst.msk [vmem:[%s4382_s5 + $0x8] sm:$0xff] %vm27_vm0, %v2771_v47 }
0x1b56   :  { %v3554_v37 = vpop.eup %3553 }
0x1b57   :  { %v2758_v14 = vsub.f32 %v4328_v23, %v2750_v1  ;;  %v2748_v2 = vmul.f32 0.6931472, %v3554_v37 }
0x1b59   :  { %2766 = vst [vmem:[%s4383_s4 + $0x38] sm:$0xff] %v2758_v14  ;;  %v2757_v3 = vsub.f32 %v4331_v27, %v2748_v2 }
0x1b5b   :  { %2765 = vst [vmem:[%s4383_s4 + $0x30] sm:$0xff] %v2757_v3 }

</bundles_post_ra>
